<compile_context>
chip_gen: v6e
topology: v6e:2x2x1
jax: 0.10.0
libtpu: 0.0.40
codegen_flags: <defaults>
</compile_context>

<pallas_src>
from functools import partial

import jax
import jax.numpy as jnp
from jax import lax
from jax.experimental import pallas as pl
from jax.experimental.pallas import tpu as pltpu

# ---- hyperparameters (from the PyTorch script) ----
N_EMBD = 144
N_HEAD = 4
HEAD_SIZE = N_EMBD // N_HEAD        # 36
HEAD_PAD = 128                      # zero-padded per-head dim -> 128-lane-aligned slices
BLOCK_SIZE = 128
SCALE = HEAD_SIZE ** -0.5           # PyTorch: k.shape[-1] ** -0.5 (true head size)
NEG_INF = -1e30


# ---------------- fused multi-head attention kernel (single step, whole batch) ----
def _mha_kernel(x_ref, wqkv_ref, wproj_ref, bproj_ref, o_ref,
                xb_ref, qkv_ref, bias_ref, *, batch, seq):
    T = seq

    # Stage activations once in bf16 (only ever consumed as MXU operands).
    xb_ref[...] = x_ref[...].astype(jnp.bfloat16)

    # Causal mask as an additive bias, built in-kernel, kept in VMEM scratch
    # (no (T,T) f32 input DMA; -1e30 is safe since the diagonal is never masked).
    row = lax.broadcasted_iota(jnp.int32, (T, T), 0)
    col = lax.broadcasted_iota(jnp.int32, (T, T), 1)
    bias_ref[...] = jnp.where(row >= col, 0.0, NEG_INF).astype(jnp.float32)

    # Initialize output with the projection bias; per-head contributions accumulate
    # directly into o_ref (VMEM) -> no f32 accumulator held live in vregs.
    o_ref[...] = jnp.broadcast_to(bproj_ref[...], o_ref.shape)

    def head_body(h, carry):
        # Fused Q|K|V projection for head h on the merged (B*T, C) slab:
        # one wide MXU matmul (N = 3*HEAD_PAD = 384), result staged in bf16 scratch.
        qkv_ref[...] = jnp.dot(
            xb_ref[...], wqkv_ref[h],
            preferred_element_type=jnp.float32).astype(jnp.bfloat16)
        wp_h = wproj_ref[h]                                     # (HEAD_PAD, C) bf16

        for b in range(batch):                                  # static, tiny (B=2)
            r0 = b * T
            q = qkv_ref[r0:r0 + T, 0:HEAD_PAD]                  # (T, 128) bf16
            k = qkv_ref[r0:r0 + T, HEAD_PAD:2 * HEAD_PAD]
            v = qkv_ref[r0:r0 + T, 2 * HEAD_PAD:3 * HEAD_PAD]

            # scores = q @ k^T (softmax scale already folded into wq at pack time)
            s = lax.dot_general(q, k, (((1,), (1,)), ((), ())),
                                preferred_element_type=jnp.float32)
            s = s + bias_ref[...]

            # f32 softmax; masked entries underflow to exactly 0
            p = jnp.exp(s - jnp.max(s, axis=-1, keepdims=True))
            inv = 1.0 / jnp.sum(p, axis=-1, keepdims=True)      # exact normalization

            o_h = jnp.dot(p.astype(jnp.bfloat16), v,
                          preferred_element_type=jnp.float32) * inv     # (T, 128) f32

            # Output projection: accumulate this head's slice of proj straight into
            # the output ref (padded rows of wp_h are zero -> numerically identical).
            o_ref[r0:r0 + T, :] += jnp.dot(o_h.astype(jnp.bfloat16), wp_h,
                                           preferred_element_type=jnp.float32)
        return carry

    lax.fori_loop(0, N_HEAD, head_body, 0)


# ---------------- one-time weight packing (HOISTED out of the per-call path) ----
def pack_params(params):
    """Pack per-head Linear weights ONCE at init time, not per forward call."""
    pad = HEAD_PAD - HEAD_SIZE
    blocks = []
    for h in params['heads']:
        q = jnp.pad(h['wq'] * SCALE, ((0, 0), (0, pad)))     # scale folded into wq
        k = jnp.pad(h['wk'], ((0, 0), (0, pad)))
        v = jnp.pad(h['wv'], ((0, 0), (0, pad)))
        blocks.append(jnp.concatenate([q, k, v], axis=1))     # (C, 3*HEAD_PAD)
    wqkv = jnp.stack(blocks).astype(jnp.bfloat16)             # (H, C, 3*HEAD_PAD)
    wproj = jnp.stack([
        jnp.pad(params['wproj'][i * HEAD_SIZE:(i + 1) * HEAD_SIZE],
                ((0, pad), (0, 0)))
        for i in range(N_HEAD)
    ]).astype(jnp.bfloat16)                                   # (H, HEAD_PAD, C)
    bproj = params['bproj'].reshape(1, N_EMBD).astype(jnp.float32)
    return wqkv, wproj, bproj


# ---------------- wrapper (per-call path: one reshape + one pallas_call only) ----
@jax.jit
def multi_head_attention(x, wqkv, wproj, bproj):
    B, T, C = x.shape
    assert C == N_EMBD and T <= BLOCK_SIZE and T % 8 == 0
    x2 = x.reshape(B * T, C).astype(jnp.float32)              # free reshape

    vmem = pl.BlockSpec(memory_space=pltpu.MemorySpace.VMEM)
    out2 = pl.pallas_call(
        partial(_mha_kernel, batch=B, seq=T),
        out_shape=jax.ShapeDtypeStruct((B * T, C), jnp.float32),
        in_specs=[vmem, vmem, vmem, vmem],
        out_specs=vmem,
        scratch_shapes=[
            pltpu.VMEM((B * T, C), jnp.bfloat16),             # bf16 activations
            pltpu.VMEM((B * T, 3 * HEAD_PAD), jnp.bfloat16),  # fused q|k|v per head
            pltpu.VMEM((T, T), jnp.float32),                  # additive causal mask
        ],
    )(x2, wqkv, wproj, bproj)
    return out2.reshape(B, T, C)


# ---------------- deterministic parameter init (per-head Linear layouts) ----
def init_params(key):
    keys = iter(jax.random.split(key, 3 * N_HEAD + 2))

    def nrm(shape):
        return 0.02 * jax.random.normal(next(keys), shape, jnp.float32)

    heads = [dict(wq=nrm((N_EMBD, HEAD_SIZE)),
                  wk=nrm((N_EMBD, HEAD_SIZE)),
                  wv=nrm((N_EMBD, HEAD_SIZE))) for _ in range(N_HEAD)]
    return dict(heads=heads,
                wproj=nrm((N_HEAD * HEAD_SIZE, N_EMBD)),
                bproj=nrm((N_EMBD,)))


# ---------------- pure-JAX reference (mirrors the PyTorch forward, eval mode) ----
def mha_reference(x, params):
    B, T, C = x.shape
    causal = jnp.tril(jnp.ones((T, T), dtype=bool))
    outs = []
    for h in params['heads']:
        q = x @ h['wq']
        k = x @ h['wk']
        v = x @ h['wv']
        wei = jnp.einsum('btd,bsd->bts', q, k) * (HEAD_SIZE ** -0.5)
        wei = jnp.where(causal, wei, -jnp.inf)
        wei = jax.nn.softmax(wei, axis=-1)
        outs.append(jnp.einsum('bts,bsd->btd', wei, v))
    out = jnp.concatenate(outs, axis=-1)
    return out @ params['wproj'] + params['bproj']


if __name__ == "__main__":
    key = jax.random.PRNGKey(0)
    pkey, xkey = jax.random.split(key)
    params = init_params(pkey)
    wqkv, wproj, bproj = pack_params(params)   # packed ONCE (hoisted per review)

    B, T = 2, BLOCK_SIZE                       # (2, 128, 144)
    x = jax.random.normal(xkey, (B, T, N_EMBD), jnp.float32)

    out = multi_head_attention(x, wqkv, wproj, bproj)
    jax.block_until_ready(out)
    assert out.shape == (B, T, N_EMBD)

    ref = mha_reference(x, params)
    err = float(jnp.max(jnp.abs(out - ref)))
    assert err < 3e-2, f"max abs err vs reference: {err}"
    print("KERNEL_OK")
</pallas_src>

<mosaic_0001>
module attributes {stable_mosaic.version = 11 : i64} {
  func.func @_mha_kernel(%arg0: memref<256x144xf32, #tpu.memory_space<vmem>>, %arg1: memref<4x144x384xbf16, #tpu.memory_space<vmem>>, %arg2: memref<4x128x144xbf16, #tpu.memory_space<vmem>>, %arg3: memref<1x144xf32, #tpu.memory_space<vmem>>, %arg4: memref<256x144xf32, #tpu.memory_space<vmem>>, %arg5: memref<256x144xbf16, #tpu.memory_space<vmem>>, %arg6: memref<256x384xbf16, #tpu.memory_space<vmem>>, %arg7: memref<128x128xf32, #tpu.memory_space<vmem>>) attributes {dimension_semantics = [], scalar_prefetch = 0 : i64, scratch_operands = 3 : i64, tpu.core_type = #tpu.core_type<tc>} {
    %c0 = arith.constant 0 : index
    %c0_0 = arith.constant 0 : index
    %0 = vector.load %arg0[%c0, %c0_0] : memref<256x144xf32, #tpu.memory_space<vmem>>, vector<256x144xf32>
    %1 = arith.truncf %0 : vector<256x144xf32> to vector<256x144xbf16>
    %c0_1 = arith.constant 0 : index
    %c0_2 = arith.constant 0 : index
    %2 = vector.load %arg5[%c0_1, %c0_2] : memref<256x144xbf16, #tpu.memory_space<vmem>>, vector<256x144xbf16>
    tpu.vector_store %arg5[%c0_1, %c0_2], %1 {strides = array<i32>} : memref<256x144xbf16, #tpu.memory_space<vmem>>, vector<256x144xbf16>,
    %3 = tpu.iota {dimensions = array<i32: 0>} : vector<128x128xi32>
    %4 = tpu.iota {dimensions = array<i32: 1>} : vector<128x128xi32>
    %5 = arith.cmpi sge, %3, %4 : vector<128x128xi32>
    %cst = arith.constant 0.000000e+00 : f32
    %cst_3 = arith.constant -1.000000e+30 : f32
    %6 = vector.broadcast %cst : f32 to vector<128x128xf32>
    %7 = vector.broadcast %cst_3 : f32 to vector<128x128xf32>
    %8 = arith.select %5, %6, %7 : vector<128x128xi1>, vector<128x128xf32>
    %c0_4 = arith.constant 0 : index
    %c0_5 = arith.constant 0 : index
    %9 = vector.load %arg7[%c0_4, %c0_5] : memref<128x128xf32, #tpu.memory_space<vmem>>, vector<128x128xf32>
    tpu.vector_store %arg7[%c0_4, %c0_5], %8 {strides = array<i32>} : memref<128x128xf32, #tpu.memory_space<vmem>>, vector<128x128xf32>,
    %c0_6 = arith.constant 0 : index
    %c0_7 = arith.constant 0 : index
    %10 = vector.load %arg3[%c0_6, %c0_7] : memref<1x144xf32, #tpu.memory_space<vmem>>, vector<1x144xf32>
    %11 = vector.shape_cast %10 : vector<1x144xf32> to vector<1x144xf32>
    %12 = vector.broadcast %11 : vector<1x144xf32> to vector<256x144xf32>
    %c0_8 = arith.constant 0 : index
    %c0_9 = arith.constant 0 : index
    %13 = vector.load %arg4[%c0_8, %c0_9] : memref<256x144xf32, #tpu.memory_space<vmem>>, vector<256x144xf32>
    tpu.vector_store %arg4[%c0_8, %c0_9], %12 {strides = array<i32>} : memref<256x144xf32, #tpu.memory_space<vmem>>, vector<256x144xf32>,
    %c0_i32 = arith.constant 0 : i32
    %c4_i32 = arith.constant 4 : i32
    %14 = arith.addi %c0_i32, %c4_i32 : i32
    %c1_i32 = arith.constant 1 : i32
    scf.for %arg8 = %c0_i32 to %14 step %c1_i32  : i32 {
      %c0_11 = arith.constant 0 : index
      %c0_12 = arith.constant 0 : index
      %15 = vector.load %arg5[%c0_11, %c0_12] : memref<256x144xbf16, #tpu.memory_space<vmem>>, vector<256x144xbf16>
      %16 = arith.index_cast %arg8 : i32 to index
      %c0_13 = arith.constant 0 : index
      %c0_14 = arith.constant 0 : index
      %17 = vector.load %arg1[%16, %c0_13, %c0_14] : memref<4x144x384xbf16, #tpu.memory_space<vmem>>, vector<1x144x384xbf16>
      %18 = vector.shape_cast %17 : vector<1x144x384xbf16> to vector<144x384xbf16>
      %cst_15 = arith.constant dense<0.000000e+00> : vector<256x384xf32>
      %19 = tpu.matmul %15, %18, %cst_15 {dimension_numbers = #tpu.dot_dimension_numbers<[1], [0], [0], [1], [0, 0, 1, 1], [], []>} : vector<256x144xbf16>, vector<144x384xbf16>, vector<256x384xf32> -> vector<256x384xf32>
      %20 = arith.truncf %19 : vector<256x384xf32> to vector<256x384xbf16>
      %c0_16 = arith.constant 0 : index
      %c0_17 = arith.constant 0 : index
      %21 = vector.load %arg6[%c0_16, %c0_17] : memref<256x384xbf16, #tpu.memory_space<vmem>>, vector<256x384xbf16>
      tpu.vector_store %arg6[%c0_16, %c0_17], %20 {strides = array<i32>} : memref<256x384xbf16, #tpu.memory_space<vmem>>, vector<256x384xbf16>,
      %22 = arith.index_cast %arg8 : i32 to index
      %c0_18 = arith.constant 0 : index
      %c0_19 = arith.constant 0 : index
      %23 = vector.load %arg2[%22, %c0_18, %c0_19] : memref<4x128x144xbf16, #tpu.memory_space<vmem>>, vector<1x128x144xbf16>
      %24 = vector.shape_cast %23 : vector<1x128x144xbf16> to vector<128x144xbf16>
      %c0_20 = arith.constant 0 : index
      %c0_21 = arith.constant 0 : index
      %25 = vector.load %arg6[%c0_20, %c0_21] : memref<256x384xbf16, #tpu.memory_space<vmem>>, vector<128x128xbf16>
      %c0_22 = arith.constant 0 : index
      %c128 = arith.constant 128 : index
      %26 = vector.load %arg6[%c0_22, %c128] : memref<256x384xbf16, #tpu.memory_space<vmem>>, vector<128x128xbf16>
      %c0_23 = arith.constant 0 : index
      %c256 = arith.constant 256 : index
      %27 = vector.load %arg6[%c0_23, %c256] : memref<256x384xbf16, #tpu.memory_space<vmem>>, vector<128x128xbf16>
      %cst_24 = arith.constant dense<0.000000e+00> : vector<128x128xf32>
      %28 = tpu.matmul %25, %26, %cst_24 {dimension_numbers = #tpu.dot_dimension_numbers<[1], [1], [0], [0], [0, 0, 1, 0], [], []>} : vector<128x128xbf16>, vector<128x128xbf16>, vector<128x128xf32> -> vector<128x128xf32>
      %c0_25 = arith.constant 0 : index
      %c0_26 = arith.constant 0 : index
      %29 = vector.load %arg7[%c0_25, %c0_26] : memref<128x128xf32, #tpu.memory_space<vmem>>, vector<128x128xf32>
      %30 = arith.addf %28, %29 : vector<128x128xf32>
      %cst_27 = arith.constant dense<0xFF800000> : vector<128xf32>
      %31 = vector.multi_reduction <maximumf>, %30, %cst_27 [1] : vector<128x128xf32> to vector<128xf32>
      %32 = vector.shape_cast %31 : vector<128xf32> to vector<128x1xf32>
      %33 = vector.broadcast %32 : vector<128x1xf32> to vector<128x128xf32>
      %34 = arith.subf %30, %33 : vector<128x128xf32>
      %35 = math.exp %34 : vector<128x128xf32>
      %cst_28 = arith.constant dense<0.000000e+00> : vector<128xf32>
      %36 = vector.multi_reduction <add>, %35, %cst_28 [1] : vector<128x128xf32> to vector<128xf32>
      %37 = vector.shape_cast %36 : vector<128xf32> to vector<128x1xf32>
      %cst_29 = arith.constant 1.000000e+00 : f32
      %38 = vector.broadcast %cst_29 : f32 to vector<128x1xf32>
      %39 = arith.divf %38, %37 : vector<128x1xf32>
      %40 = arith.truncf %35 : vector<128x128xf32> to vector<128x128xbf16>
      %cst_30 = arith.constant dense<0.000000e+00> : vector<128x128xf32>
      %41 = tpu.matmul %40, %27, %cst_30 {dimension_numbers = #tpu.dot_dimension_numbers<[1], [0], [0], [1], [0, 0, 1, 1], [], []>} : vector<128x128xbf16>, vector<128x128xbf16>, vector<128x128xf32> -> vector<128x128xf32>
      %42 = vector.broadcast %39 : vector<128x1xf32> to vector<128x128xf32>
      %43 = arith.mulf %41, %42 : vector<128x128xf32>
      %c0_31 = arith.constant 0 : index
      %c0_32 = arith.constant 0 : index
      %44 = vector.load %arg4[%c0_31, %c0_32] : memref<256x144xf32, #tpu.memory_space<vmem>>, vector<128x144xf32>
      %45 = arith.truncf %43 : vector<128x128xf32> to vector<128x128xbf16>
      %cst_33 = arith.constant dense<0.000000e+00> : vector<128x144xf32>
      %46 = tpu.matmul %45, %24, %cst_33 {dimension_numbers = #tpu.dot_dimension_numbers<[1], [0], [0], [1], [0, 0, 1, 1], [], []>} : vector<128x128xbf16>, vector<128x144xbf16>, vector<128x144xf32> -> vector<128x144xf32>
      %47 = arith.addf %44, %46 : vector<128x144xf32>
      %c0_34 = arith.constant 0 : index
      %c0_35 = arith.constant 0 : index
      %48 = vector.load %arg4[%c0_34, %c0_35] : memref<256x144xf32, #tpu.memory_space<vmem>>, vector<128x144xf32>
      tpu.vector_store %arg4[%c0_34, %c0_35], %47 {strides = array<i32>} : memref<256x144xf32, #tpu.memory_space<vmem>>, vector<128x144xf32>,
      %c128_36 = arith.constant 128 : index
      %c0_37 = arith.constant 0 : index
      %49 = vector.load %arg6[%c128_36, %c0_37] : memref<256x384xbf16, #tpu.memory_space<vmem>>, vector<128x128xbf16>
      %c128_38 = arith.constant 128 : index
      %c128_39 = arith.constant 128 : index
      %50 = vector.load %arg6[%c128_38, %c128_39] : memref<256x384xbf16, #tpu.memory_space<vmem>>, vector<128x128xbf16>
      %c128_40 = arith.constant 128 : index
      %c256_41 = arith.constant 256 : index
      %51 = vector.load %arg6[%c128_40, %c256_41] : memref<256x384xbf16, #tpu.memory_space<vmem>>, vector<128x128xbf16>
      %cst_42 = arith.constant dense<0.000000e+00> : vector<128x128xf32>
      %52 = tpu.matmul %49, %50, %cst_42 {dimension_numbers = #tpu.dot_dimension_numbers<[1], [1], [0], [0], [0, 0, 1, 0], [], []>} : vector<128x128xbf16>, vector<128x128xbf16>, vector<128x128xf32> -> vector<128x128xf32>
      %c0_43 = arith.constant 0 : index
      %c0_44 = arith.constant 0 : index
      %53 = vector.load %arg7[%c0_43, %c0_44] : memref<128x128xf32, #tpu.memory_space<vmem>>, vector<128x128xf32>
      %54 = arith.addf %52, %53 : vector<128x128xf32>
      %cst_45 = arith.constant dense<0xFF800000> : vector<128xf32>
      %55 = vector.multi_reduction <maximumf>, %54, %cst_45 [1] : vector<128x128xf32> to vector<128xf32>
      %56 = vector.shape_cast %55 : vector<128xf32> to vector<128x1xf32>
      %57 = vector.broadcast %56 : vector<128x1xf32> to vector<128x128xf32>
      %58 = arith.subf %54, %57 : vector<128x128xf32>
      %59 = math.exp %58 : vector<128x128xf32>
      %cst_46 = arith.constant dense<0.000000e+00> : vector<128xf32>
      %60 = vector.multi_reduction <add>, %59, %cst_46 [1] : vector<128x128xf32> to vector<128xf32>
      %61 = vector.shape_cast %60 : vector<128xf32> to vector<128x1xf32>
      %cst_47 = arith.constant 1.000000e+00 : f32
      %62 = vector.broadcast %cst_47 : f32 to vector<128x1xf32>
      %63 = arith.divf %62, %61 : vector<128x1xf32>
      %64 = arith.truncf %59 : vector<128x128xf32> to vector<128x128xbf16>
      %cst_48 = arith.constant dense<0.000000e+00> : vector<128x128xf32>
      %65 = tpu.matmul %64, %51, %cst_48 {dimension_numbers = #tpu.dot_dimension_numbers<[1], [0], [0], [1], [0, 0, 1, 1], [], []>} : vector<128x128xbf16>, vector<128x128xbf16>, vector<128x128xf32> -> vector<128x128xf32>
      %66 = vector.broadcast %63 : vector<128x1xf32> to vector<128x128xf32>
      %67 = arith.mulf %65, %66 : vector<128x128xf32>
      %c128_49 = arith.constant 128 : index
      %c0_50 = arith.constant 0 : index
      %68 = vector.load %arg4[%c128_49, %c0_50] : memref<256x144xf32, #tpu.memory_space<vmem>>, vector<128x144xf32>
      %69 = arith.truncf %67 : vector<128x128xf32> to vector<128x128xbf16>
      %cst_51 = arith.constant dense<0.000000e+00> : vector<128x144xf32>
      %70 = tpu.matmul %69, %24, %cst_51 {dimension_numbers = #tpu.dot_dimension_numbers<[1], [0], [0], [1], [0, 0, 1, 1], [], []>} : vector<128x128xbf16>, vector<128x144xbf16>, vector<128x144xf32> -> vector<128x144xf32>
      %71 = arith.addf %68, %70 : vector<128x144xf32>
      %c128_52 = arith.constant 128 : index
      %c0_53 = arith.constant 0 : index
      %72 = vector.load %arg4[%c128_52, %c0_53] : memref<256x144xf32, #tpu.memory_space<vmem>>, vector<128x144xf32>
      tpu.vector_store %arg4[%c128_52, %c0_53], %71 {strides = array<i32>} : memref<256x144xf32, #tpu.memory_space<vmem>>, vector<128x144xf32>,
    }
    %c4_i32_10 = arith.constant 4 : i32
    return
  }
}

</mosaic_0001>

<bundles_post_ra>
// kernel: multi_head_attention.1
= control target key start
LH: loop header
LB: loop body
LE: loop exit
PB: predicated region body
PF: predicated region fallthrough
CT: control target
= control target key end

     0   :  { %vm274_vm0 = vcmask 1043456   ;;  %vm275_vm1 = vcmask 130052   ;;  %v309_v0 = vlaneseq  ;;  %v4152_v24 = vmov -1e+30   ;;  %s4758_s29 = smov 0   ;;  %s5610_s0 = inlined_call_operand.vmem [shape: f32[256,144], index: 0, kind: input, shape index: {}]   ;;  %s5611_s1 = inlined_call_operand.vmem [shape: bf16[4,144,384], index: 1, kind: input, shape index: {}]   ;;  %s5612_s2 = inlined_call_operand.vmem [shape: bf16[4,128,144], index: 2, kind: input, shape index: {}]   ;;  %s5613_s3 = inlined_call_operand.vmem [shape: f32[1,144], index: 3, kind: input, shape index: {}]   ;;  %s5614_s4 = inlined_call_operand.vmem [shape: f32[256,144], index: 4, kind: output, shape index: {}]  }
   0x1   :  { %v18_v1 = vld [vmem:[%s5610_s0] sm:$0xff]  ;;  %v19_v2 = vld [vmem:[%s5610_s0 + $0x8] sm:$0xff]  ;;  %vm4185_vm2 = vmor %vm275_vm1, %vm274_vm0  ;;  %vm389_vm11 = vcmask 130048  }
   0x2   :  { %v3544_v4 = vpack.c.bf16 %v19_v2, %v18_v1  ;;  %v20_v5 = vld [vmem:[%s5610_s0 + $0x10] sm:$0xff]  ;;  %v21_v6 = vld [vmem:[%s5610_s0 + $0x18] sm:$0xff]  ;;  %v22_v7 = vld [vmem:[%s5610_s0 + $0x20] sm:$0xff]  ;;  %v4198_v8 = vshrl.u32 %v309_v0, 7  ;;  %v4200_v9 = vand.u32 127, %v309_v0 }
   0x3   :  { %v3545_v10 = vpack.c.bf16 %v21_v6, %v20_v5  ;;  %v23_v11 = vld [vmem:[%s5610_s0 + $0x28] sm:$0xff]  ;;  %v24_v12 = vld [vmem:[%s5610_s0 + $0x30] sm:$0xff]  ;;  %v25_v13 = vld [vmem:[%s5610_s0 + $0x38] sm:$0xff] }
   0x4   :  { %277 = vst.msk [vmem:[#allocation2] sm:$0xff] %vm4185_vm2, %v3544_v4  ;;  %v3546_v14 = vpack.c.bf16 %v23_v11, %v22_v7  ;;  %v3547_v15 = vpack.c.bf16 %v25_v13, %v24_v12  ;;  %v26_v16 = vld [vmem:[%s5610_s0 + $0x40] sm:$0xff]  ;;  %v27_v17 = vld [vmem:[%s5610_s0 + $0x48] sm:$0xff]  ;;  %v28_v18 = vld [vmem:[%s5610_s0 + $0x50] sm:$0xff]  ;;  %vm328_vm3 = vcmp.ge.s32.totalorder %v4198_v8, %v4200_v9  ;;  %v380_v19 = vsub.s32 0, %v4198_v8 }
   0x5   :  { %278 = vst.msk [vmem:[#allocation2 + $0x8] sm:$0xff] %vm4185_vm2, %v3545_v10  ;;  %v3548_v20 = vpack.c.bf16 %v27_v17, %v26_v16  ;;  %v29_v21 = vld [vmem:[%s5610_s0 + $0x58] sm:$0xff]  ;;  %v30_v22 = vld [vmem:[%s5610_s0 + $0x60] sm:$0xff]  ;;  %v31_v23 = vld [vmem:[%s5610_s0 + $0x68] sm:$0xff]  ;;  %v344_v25 = vsel %vm328_vm3, 0.0, %v4152_v24  ;;  %v384_v26 = vsub.s32 1, %v4198_v8 }
   0x6   :  { %v311_v27 = vadd.s32 8, %v4198_v8  ;;  %279 = vst.msk [vmem:[#allocation2 + $0x10] sm:$0xff] %vm4185_vm2, %v3546_v14  ;;  %280 = vst.msk [vmem:[#allocation2 + $0x18] sm:$0xff] %vm4185_vm2, %v3547_v15  ;;  %v3549_v28 = vpack.c.bf16 %v29_v21, %v28_v18  ;;  %v3550_v29 = vpack.c.bf16 %v31_v23, %v30_v22  ;;  %v32_v30 = vld [vmem:[%s5610_s0 + $0x70] sm:$0xff]  ;;  %v33_v31 = vld [vmem:[%s5610_s0 + $0x78] sm:$0xff]  ;;  %v312_v33 = vadd.s32 16, %v4198_v8 }
   0x7   :  { %v34_v32 = vld [vmem:[%s5610_s0 + $0x80] sm:$0xff]  ;;  %360 = vst [vmem:[#allocation4 + $0x30] sm:$0xff] %v344_v25  ;;  %v313_v34 = vadd.s32 24, %v4198_v8  ;;  %281 = vst.msk [vmem:[#allocation2 + $0x20] sm:$0xff] %vm4185_vm2, %v3548_v20  ;;  %v3551_v35 = vpack.c.bf16 %v33_v31, %v32_v30  ;;  %v35_v36 = vld [vmem:[%s5610_s0 + $0x88] sm:$0xff]  ;;  %v314_v39 = vadd.s32 32, %v4198_v8 }
   0x8   :  { %v36_v37 = vld [vmem:[%s5610_s0 + $0x90] sm:$0xff]  ;;  %v37_v38 = vld [vmem:[%s5610_s0 + $0x98] sm:$0xff]  ;;  %vm329_vm4 = vcmp.ge.s32.totalorder %v311_v27, %v4200_v9  ;;  %v315_v40 = vadd.s32 40, %v4198_v8  ;;  %282 = vst.msk [vmem:[#allocation2 + $0x28] sm:$0xff] %vm4185_vm2, %v3549_v28  ;;  %283 = vst.msk [vmem:[#allocation2 + $0x30] sm:$0xff] %vm4185_vm2, %v3550_v29  ;;  %v3552_v41 = vpack.c.bf16 %v35_v36, %v34_v32  ;;  %vm330_vm5 = vcmp.ge.s32.totalorder %v312_v33, %v4200_v9 }
   0x9   :  { %v3553_v42 = vpack.c.bf16 %v37_v38, %v36_v37  ;;  %v38_v43 = vld [vmem:[%s5610_s0 + $0xa0] sm:$0xff]  ;;  %v39_v44 = vld [vmem:[%s5610_s0 + $0xa8] sm:$0xff]  ;;  %v40_v45 = vld [vmem:[%s5610_s0 + $0xb0] sm:$0xff]  ;;  %v345_v46 = vsel %vm329_vm4, 0.0, %v4152_v24  ;;  %284 = vst.msk [vmem:[#allocation2 + $0x38] sm:$0xff] %vm4185_vm2, %v3551_v35  ;;  %v346_v51 = vsel %vm330_vm5, 0.0, %v4152_v24  ;;  %vm331_vm6 = vcmp.ge.s32.totalorder %v313_v34, %v4200_v9 }
   0xa   :  { %v3554_v47 = vpack.c.bf16 %v39_v44, %v38_v43  ;;  %v41_v48 = vld [vmem:[%s5610_s0 + $0xb8] sm:$0xff]  ;;  %v42_v49 = vld [vmem:[%s5610_s0 + $0xc0] sm:$0xff]  ;;  %v43_v50 = vld [vmem:[%s5610_s0 + $0xc8] sm:$0xff]  ;;  %361 = vst [vmem:[#allocation4] sm:$0xff] %v345_v46  ;;  %vm332_vm7 = vcmp.ge.s32.totalorder %v314_v39, %v4200_v9  ;;  %v347_v57 = vsel %vm331_vm6, 0.0, %v4152_v24  ;;  %vm333_vm8 = vcmp.ge.s32.totalorder %v315_v40, %v4200_v9 }
   0xb   :  { %285 = vst.msk [vmem:[#allocation2 + $0x40] sm:$0xff] %vm4185_vm2, %v3552_v41  ;;  %286 = vst.msk [vmem:[#allocation2 + $0x48] sm:$0xff] %vm4185_vm2, %v3553_v42  ;;  %v3555_v52 = vpack.c.bf16 %v41_v48, %v40_v45  ;;  %v3556_v53 = vpack.c.bf16 %v43_v50, %v42_v49  ;;  %v44_v54 = vld [vmem:[%s5610_s0 + $0xd0] sm:$0xff]  ;;  %v45_v55 = vld [vmem:[%s5610_s0 + $0xd8] sm:$0xff]  ;;  %v348_v58 = vsel %vm332_vm7, 0.0, %v4152_v24  ;;  %v316_v63 = vadd.s32 48, %v4198_v8 }
   0xc   :  { %v46_v56 = vld [vmem:[%s5610_s0 + $0xe0] sm:$0xff]  ;;  %362 = vst [vmem:[#allocation4 + $0x58] sm:$0xff] %v346_v51  ;;  %287 = vst.msk [vmem:[#allocation2 + $0x50] sm:$0xff] %vm4185_vm2, %v3554_v47  ;;  %v3557_v59 = vpack.c.bf16 %v45_v55, %v44_v54  ;;  %v47_v60 = vld [vmem:[%s5610_s0 + $0xe8] sm:$0xff]  ;;  %v317_v0 = vadd.s32 56, %v4198_v8  ;;  %v349_v7 = vsel %vm333_vm8, 0.0, %v4152_v24 }
   0xd   :  { %v48_v61 = vld [vmem:[%s5610_s0 + $0xf0] sm:$0xff]  ;;  %v49_v62 = vld [vmem:[%s5610_s0 + $0xf8] sm:$0xff]  ;;  %363 = vst [vmem:[#allocation4 + $0x18] sm:$0xff] %v347_v57  ;;  %364 = vst [vmem:[#allocation4 + $0x50] sm:$0xff] %v348_v58  ;;  %v3558_v1 = vpack.c.bf16 %v47_v60, %v46_v56  ;;  %v318_v10 = vadd.s32 64, %v4198_v8  ;;  %vm334_vm9 = vcmp.ge.s32.totalorder %v316_v63, %v4200_v9  ;;  %v319_v15 = vadd.s32 72, %v4198_v8 }
   0xe   :  { %288 = vst.msk [vmem:[#allocation2 + $0x58] sm:$0xff] %vm4185_vm2, %v3555_v52  ;;  %289 = vst.msk [vmem:[#allocation2 + $0x60] sm:$0xff] %vm4185_vm2, %v3556_v53  ;;  %v3559_v2 = vpack.c.bf16 %v49_v62, %v48_v61  ;;  %v50_v4 = vld [vmem:[%s5610_s0 + $0x100] sm:$0xff]  ;;  %v51_v5 = vld [vmem:[%s5610_s0 + $0x108] sm:$0xff]  ;;  %vm335_vm10 = vcmp.ge.s32.totalorder %v317_v0, %v4200_v9  ;;  %v350_v22 = vsel %vm334_vm9, 0.0, %v4152_v24  ;;  %v320_v30 = vadd.s32 80, %v4198_v8 }
   0xf   :  { %v52_v6 = vld [vmem:[%s5610_s0 + $0x110] sm:$0xff]  ;;  %290 = vst.msk [vmem:[#allocation2 + $0x68] sm:$0xff] %vm4185_vm2, %v3557_v59  ;;  %v3560_v11 = vpack.c.bf16 %v51_v5, %v50_v4  ;;  %v53_v12 = vld [vmem:[%s5610_s0 + $0x118] sm:$0xff]  ;;  %v54_v13 = vld [vmem:[%s5610_s0 + $0x120] sm:$0xff]  ;;  %v351_v23 = vsel %vm335_vm10, 0.0, %v4152_v24  ;;  %vm336_vm12 = vcmp.ge.s32.totalorder %v318_v10, %v4200_v9  ;;  %vm337_vm13 = vcmp.ge.s32.totalorder %v319_v15, %v4200_v9 }
  0x10   :  { %v55_v14 = vld [vmem:[%s5610_s0 + $0x128] sm:$0xff]  ;;  %365 = vst [vmem:[#allocation4 + $0x68] sm:$0xff] %v349_v7  ;;  %291 = vst.msk [vmem:[#allocation2 + $0x70] sm:$0xff] %vm4185_vm2, %v3558_v1  ;;  %v3561_v16 = vpack.c.bf16 %v53_v12, %v52_v6  ;;  %v56_v18 = vld [vmem:[%s5610_s0 + $0x130] sm:$0xff]  ;;  %v352_v36 = vsel %vm336_vm12, 0.0, %v4152_v24  ;;  %v353_v37 = vsel %vm337_vm13, 0.0, %v4152_v24  ;;  %vm338_vm14 = vcmp.ge.s32.totalorder %v320_v30, %v4200_v9 }
  0x11   :  { %292 = vst.msk [vmem:[#allocation2 + $0x78] sm:$0xff] %vm4185_vm2, %v3559_v2  ;;  %v3562_v17 = vpack.c.bf16 %v55_v14, %v54_v13  ;;  %v57_v20 = vld [vmem:[%s5610_s0 + $0x138] sm:$0xff]  ;;  %v58_v21 = vld [vmem:[%s5610_s0 + $0x140] sm:$0xff]  ;;  %293 = vst.msk [vmem:[#allocation2 + $0x80] sm:$0xff] %vm4185_vm2, %v3560_v11  ;;  %v321_v42 = vadd.s32 88, %v4198_v8  ;;  %v322_v43 = vadd.s32 96, %v4198_v8 }
  0x12   :  { %v3563_v25 = vpack.c.bf16 %v57_v20, %v56_v18  ;;  %v59_v27 = vld [vmem:[%s5610_s0 + $0x148] sm:$0xff]  ;;  %v60_v28 = vld [vmem:[%s5610_s0 + $0x150] sm:$0xff]  ;;  %v61_v29 = vld [vmem:[%s5610_s0 + $0x158] sm:$0xff]  ;;  %366 = vst [vmem:[#allocation4 + $0x8] sm:$0xff] %v350_v22  ;;  %v354_v49 = vsel %vm338_vm14, 0.0, %v4152_v24  ;;  %v323_v50 = vadd.s32 104, %v4198_v8 }
  0x13   :  { %367 = vst [vmem:[#allocation4 + $0x48] sm:$0xff] %v351_v23  ;;  %294 = vst.msk [vmem:[#allocation2 + $0x88] sm:$0xff] %vm4185_vm2, %v3561_v16  ;;  %v3564_v31 = vpack.c.bf16 %v59_v27, %v58_v21  ;;  %v3565_v32 = vpack.c.bf16 %v61_v29, %v60_v28  ;;  %v62_v33 = vld [vmem:[%s5610_s0 + $0x160] sm:$0xff]  ;;  %v63_v34 = vld [vmem:[%s5610_s0 + $0x168] sm:$0xff]  ;;  %vm339_vm15 = vcmp.ge.s32.totalorder %v321_v42, %v4200_v9  ;;  %v324_v55 = vadd.s32 112, %v4198_v8 }
  0x14   :  { %295 = vst.msk [vmem:[#allocation2 + $0x90] sm:$0xff] %vm4185_vm2, %v3562_v17  ;;  %v64_v35 = vld [vmem:[%s5610_s0 + $0x170] sm:$0xff]  ;;  %296 = vst.msk [vmem:[#allocation2 + $0x98] sm:$0xff] %vm4185_vm2, %v3563_v25  ;;  %v3566_v38 = vpack.c.bf16 %v63_v34, %v62_v33  ;;  %v65_v39 = vld [vmem:[%s5610_s0 + $0x178] sm:$0xff]  ;;  %vm340_vm0 = vcmp.ge.s32.totalorder %v322_v43, %v4200_v9  ;;  %v355_v61 = vsel %vm339_vm15, 0.0, %v4152_v24  ;;  %vm341_vm1 = vcmp.ge.s32.totalorder %v323_v50, %v4200_v9 }
  0x15   :  { %v66_v40 = vld [vmem:[%s5610_s0 + $0x180] sm:$0xff]  ;;  %v67_v41 = vld [vmem:[%s5610_s0 + $0x188] sm:$0xff]  ;;  %368 = vst [vmem:[#allocation4 + $0x40] sm:$0xff] %v352_v36  ;;  %369 = vst [vmem:[#allocation4 + $0x20] sm:$0xff] %v353_v37  ;;  %v3567_v44 = vpack.c.bf16 %v65_v39, %v64_v35  ;;  %v356_v62 = vsel %vm340_vm0, 0.0, %v4152_v24  ;;  %vm342_vm3 = vcmp.ge.s32.totalorder %v324_v55, %v4200_v9  ;;  %v325_v4 = vadd.s32 120, %v4198_v8 }
  0x16   :  { %297 = vst.msk [vmem:[#allocation2 + $0xa0] sm:$0xff] %vm4185_vm2, %v3564_v31  ;;  %298 = vst.msk [vmem:[#allocation2 + $0xa8] sm:$0xff] %vm4185_vm2, %v3565_v32  ;;  %v3568_v45 = vpack.c.bf16 %v67_v41, %v66_v40  ;;  %v68_v46 = vld [vmem:[%s5610_s0 + $0x190] sm:$0xff]  ;;  %v69_v47 = vld [vmem:[%s5610_s0 + $0x198] sm:$0xff]  ;;  %v357_v12 = vsel %vm341_vm1, 0.0, %v4152_v24  ;;  %v358_v13 = vsel %vm342_vm3, 0.0, %v4152_v24 }
  0x17   :  { %v70_v48 = vld [vmem:[%s5610_s0 + $0x1a0] sm:$0xff]  ;;  %299 = vst.msk [vmem:[#allocation2 + $0xb0] sm:$0xff] %vm4185_vm2, %v3566_v38  ;;  %v3569_v51 = vpack.c.bf16 %v69_v47, %v68_v46  ;;  %v71_v52 = vld [vmem:[%s5610_s0 + $0x1a8] sm:$0xff]  ;;  %v72_v53 = vld [vmem:[%s5610_s0 + $0x1b0] sm:$0xff]  ;;  %vm343_vm4 = vcmp.ge.s32.totalorder %v325_v4, %v4200_v9 }
  0x18   :  { %v73_v54 = vld [vmem:[%s5610_s0 + $0x1b8] sm:$0xff]  ;;  %370 = vst [vmem:[#allocation4 + $0x10] sm:$0xff] %v354_v49  ;;  %300 = vst.msk [vmem:[#allocation2 + $0xb8] sm:$0xff] %vm4185_vm2, %v3567_v44  ;;  %v3570_v56 = vpack.c.bf16 %v71_v52, %v70_v48  ;;  %v74_v58 = vld [vmem:[%s5610_s0 + $0x1c0] sm:$0xff]  ;;  %v359_v17 = vsel %vm343_vm4, 0.0, %v4152_v24 }
  0x19   :  { %301 = vst.msk [vmem:[#allocation2 + $0xc0] sm:$0xff] %vm4185_vm2, %v3568_v45  ;;  %v3571_v57 = vpack.c.bf16 %v73_v54, %v72_v53  ;;  %v75_v59 = vld [vmem:[%s5610_s0 + $0x1c8] sm:$0xff]  ;;  %v76_v60 = vld [vmem:[%s5610_s0 + $0x1d0] sm:$0xff]  ;;  %302 = vst.msk [vmem:[#allocation2 + $0xc8] sm:$0xff] %vm4185_vm2, %v3569_v51 }
  0x1a   :  { %v3572_v63 = vpack.c.bf16 %v75_v59, %v74_v58  ;;  %v77_v0 = vld [vmem:[%s5610_s0 + $0x1d8] sm:$0xff]  ;;  %v78_v1 = vld [vmem:[%s5610_s0 + $0x1e0] sm:$0xff]  ;;  %v79_v2 = vld [vmem:[%s5610_s0 + $0x1e8] sm:$0xff]  ;;  %371 = vst [vmem:[#allocation4 + $0x38] sm:$0xff] %v355_v61 }
  0x1b   :  { %372 = vst [vmem:[#allocation4 + $0x60] sm:$0xff] %v356_v62  ;;  %303 = vst.msk [vmem:[#allocation2 + $0xd0] sm:$0xff] %vm4185_vm2, %v3570_v56  ;;  %v3573_v5 = vpack.c.bf16 %v77_v0, %v76_v60  ;;  %v3574_v6 = vpack.c.bf16 %v79_v2, %v78_v1  ;;  %v80_v7 = vld [vmem:[%s5610_s0 + $0x1f0] sm:$0xff]  ;;  %v81_v10 = vld [vmem:[%s5610_s0 + $0x1f8] sm:$0xff] }
  0x1c   :  { %304 = vst.msk [vmem:[#allocation2 + $0xd8] sm:$0xff] %vm4185_vm2, %v3571_v57  ;;  %v376_v11 = vld [vmem:[%s5613_s3] sm:$0x3]  ;;  %305 = vst.msk [vmem:[#allocation2 + $0xe0] sm:$0xff] %vm4185_vm2, %v3572_v63  ;;  %v3575_v14 = vpack.c.bf16 %v81_v10, %v80_v7 }
  0x1d   :  { %v381_v15 = vrot.slane %v376_v11, %v380_v19  ;;  %v4492_v16 = vrot.slane %v376_v11, %v384_v26  ;;  %373 = vst [vmem:[#allocation4 + $0x70] sm:$0xff] %v357_v12  ;;  %374 = vst [vmem:[#allocation4 + $0x78] sm:$0xff] %v358_v13 }
  0x1e   :  { %306 = vst.msk [vmem:[#allocation2 + $0xe8] sm:$0xff] %vm4185_vm2, %v3573_v5  ;;  %307 = vst.msk [vmem:[#allocation2 + $0xf0] sm:$0xff] %vm4185_vm2, %v3574_v6 }
  0x1f   :  { %308 = vst.msk [vmem:[#allocation2 + $0xf8] sm:$0xff] %vm4185_vm2, %v3575_v14  ;;  %375 = vst [vmem:[#allocation4 + $0x28] sm:$0xff] %v359_v17 }
  0x20   :  { %388 = vst [vmem:[%s5614_s4] sm:$0xff] %v381_v15  ;;  %391 = vst [vmem:[%s5614_s4 + $0x10] sm:$0xff] %v381_v15 }
  0x21   :  { %393 = vst [vmem:[%s5614_s4 + $0x20] sm:$0xff] %v381_v15  ;;  %395 = vst [vmem:[%s5614_s4 + $0x30] sm:$0xff] %v381_v15 }
  0x22   :  { %397 = vst [vmem:[%s5614_s4 + $0x40] sm:$0xff] %v381_v15  ;;  %399 = vst [vmem:[%s5614_s4 + $0x50] sm:$0xff] %v381_v15 }
  0x23   :  { %401 = vst [vmem:[%s5614_s4 + $0x60] sm:$0xff] %v381_v15  ;;  %403 = vst [vmem:[%s5614_s4 + $0x70] sm:$0xff] %v381_v15 }
  0x24   :  { %405 = vst [vmem:[%s5614_s4 + $0x80] sm:$0xff] %v381_v15  ;;  %407 = vst [vmem:[%s5614_s4 + $0x90] sm:$0xff] %v381_v15 }
  0x25   :  { %409 = vst [vmem:[%s5614_s4 + $0xa0] sm:$0xff] %v381_v15  ;;  %411 = vst [vmem:[%s5614_s4 + $0xb0] sm:$0xff] %v381_v15 }
  0x26   :  { %413 = vst [vmem:[%s5614_s4 + $0xc0] sm:$0xff] %v381_v15  ;;  %415 = vst [vmem:[%s5614_s4 + $0xd0] sm:$0xff] %v381_v15 }
  0x27   :  { %417 = vst [vmem:[%s5614_s4 + $0xe0] sm:$0xff] %v381_v15  ;;  %419 = vst [vmem:[%s5614_s4 + $0xf0] sm:$0xff] %v381_v15 }
  0x28   :  { %421 = vst [vmem:[%s5614_s4 + $0x100] sm:$0xff] %v381_v15  ;;  %423 = vst [vmem:[%s5614_s4 + $0x110] sm:$0xff] %v381_v15 }
  0x29   :  { %425 = vst [vmem:[%s5614_s4 + $0x120] sm:$0xff] %v381_v15  ;;  %427 = vst [vmem:[%s5614_s4 + $0x130] sm:$0xff] %v381_v15 }
  0x2a   :  { %429 = vst [vmem:[%s5614_s4 + $0x140] sm:$0xff] %v381_v15  ;;  %431 = vst [vmem:[%s5614_s4 + $0x150] sm:$0xff] %v381_v15 }
  0x2b   :  { %433 = vst [vmem:[%s5614_s4 + $0x160] sm:$0xff] %v381_v15  ;;  %435 = vst [vmem:[%s5614_s4 + $0x170] sm:$0xff] %v381_v15 }
  0x2c   :  { %437 = vst [vmem:[%s5614_s4 + $0x180] sm:$0xff] %v381_v15  ;;  %439 = vst [vmem:[%s5614_s4 + $0x190] sm:$0xff] %v381_v15 }
  0x2d   :  { %441 = vst [vmem:[%s5614_s4 + $0x1a0] sm:$0xff] %v381_v15  ;;  %443 = vst [vmem:[%s5614_s4 + $0x1b0] sm:$0xff] %v381_v15 }
  0x2e   :  { %445 = vst [vmem:[%s5614_s4 + $0x1c0] sm:$0xff] %v381_v15  ;;  %447 = vst [vmem:[%s5614_s4 + $0x1d0] sm:$0xff] %v381_v15 }
  0x2f   :  { %449 = vst [vmem:[%s5614_s4 + $0x1e0] sm:$0xff] %v381_v15  ;;  %451 = vst [vmem:[%s5614_s4 + $0x1f0] sm:$0xff] %v381_v15 }
  0x30   :  { %390 = vst.msk [vmem:[%s5614_s4 + $0x8] sm:$0xff] %vm389_vm11, %v4492_v16  ;;  %392 = vst.msk [vmem:[%s5614_s4 + $0x18] sm:$0xff] %vm389_vm11, %v4492_v16 }
  0x31   :  { %394 = vst.msk [vmem:[%s5614_s4 + $0x28] sm:$0xff] %vm389_vm11, %v4492_v16  ;;  %396 = vst.msk [vmem:[%s5614_s4 + $0x38] sm:$0xff] %vm389_vm11, %v4492_v16 }
  0x32   :  { %398 = vst.msk [vmem:[%s5614_s4 + $0x48] sm:$0xff] %vm389_vm11, %v4492_v16  ;;  %400 = vst.msk [vmem:[%s5614_s4 + $0x58] sm:$0xff] %vm389_vm11, %v4492_v16 }
  0x33   :  { %402 = vst.msk [vmem:[%s5614_s4 + $0x68] sm:$0xff] %vm389_vm11, %v4492_v16  ;;  %404 = vst.msk [vmem:[%s5614_s4 + $0x78] sm:$0xff] %vm389_vm11, %v4492_v16 }
  0x34   :  { %406 = vst.msk [vmem:[%s5614_s4 + $0x88] sm:$0xff] %vm389_vm11, %v4492_v16  ;;  %408 = vst.msk [vmem:[%s5614_s4 + $0x98] sm:$0xff] %vm389_vm11, %v4492_v16 }
  0x35   :  { %410 = vst.msk [vmem:[%s5614_s4 + $0xa8] sm:$0xff] %vm389_vm11, %v4492_v16  ;;  %412 = vst.msk [vmem:[%s5614_s4 + $0xb8] sm:$0xff] %vm389_vm11, %v4492_v16 }
  0x36   :  { %414 = vst.msk [vmem:[%s5614_s4 + $0xc8] sm:$0xff] %vm389_vm11, %v4492_v16  ;;  %416 = vst.msk [vmem:[%s5614_s4 + $0xd8] sm:$0xff] %vm389_vm11, %v4492_v16 }
  0x37   :  { %418 = vst.msk [vmem:[%s5614_s4 + $0xe8] sm:$0xff] %vm389_vm11, %v4492_v16  ;;  %420 = vst.msk [vmem:[%s5614_s4 + $0xf8] sm:$0xff] %vm389_vm11, %v4492_v16 }
  0x38   :  { %422 = vst.msk [vmem:[%s5614_s4 + $0x108] sm:$0xff] %vm389_vm11, %v4492_v16  ;;  %424 = vst.msk [vmem:[%s5614_s4 + $0x118] sm:$0xff] %vm389_vm11, %v4492_v16 }
  0x39   :  { %426 = vst.msk [vmem:[%s5614_s4 + $0x128] sm:$0xff] %vm389_vm11, %v4492_v16  ;;  %428 = vst.msk [vmem:[%s5614_s4 + $0x138] sm:$0xff] %vm389_vm11, %v4492_v16 }
  0x3a   :  { %430 = vst.msk [vmem:[%s5614_s4 + $0x148] sm:$0xff] %vm389_vm11, %v4492_v16  ;;  %432 = vst.msk [vmem:[%s5614_s4 + $0x158] sm:$0xff] %vm389_vm11, %v4492_v16 }
  0x3b   :  { %434 = vst.msk [vmem:[%s5614_s4 + $0x168] sm:$0xff] %vm389_vm11, %v4492_v16  ;;  %436 = vst.msk [vmem:[%s5614_s4 + $0x178] sm:$0xff] %vm389_vm11, %v4492_v16 }
  0x3c   :  { %438 = vst.msk [vmem:[%s5614_s4 + $0x188] sm:$0xff] %vm389_vm11, %v4492_v16  ;;  %440 = vst.msk [vmem:[%s5614_s4 + $0x198] sm:$0xff] %vm389_vm11, %v4492_v16 }
  0x3d   :  { %442 = vst.msk [vmem:[%s5614_s4 + $0x1a8] sm:$0xff] %vm389_vm11, %v4492_v16  ;;  %444 = vst.msk [vmem:[%s5614_s4 + $0x1b8] sm:$0xff] %vm389_vm11, %v4492_v16 }
  0x3e   :  { %446 = vst.msk [vmem:[%s5614_s4 + $0x1c8] sm:$0xff] %vm389_vm11, %v4492_v16  ;;  %448 = vst.msk [vmem:[%s5614_s4 + $0x1d8] sm:$0xff] %vm389_vm11, %v4492_v16 }
  0x3f   :  { %450 = vst.msk [vmem:[%s5614_s4 + $0x1e8] sm:$0xff] %vm389_vm11, %v4492_v16  ;;  %452 = vst.msk [vmem:[%s5614_s4 + $0x1f8] sm:$0xff] %vm389_vm11, %v4492_v16 }
  0x40 LB: > { %v3889_v3 = vld [vmem:[#allocation2 + $0x4] ss:$8 sps:$4 sm:$0xff]   ;;  %s3576_s30 = smul.u32 216, %s4150_s29  ;;  %v4789_v34 = vld [vmem:[#allocation2] ss:$8 sps:$4 sm:$0xff]   ;;  %v4153_v54 = vmov 0   ;;  %s4150_s29 = sphi %s4758_s29, %s458_s29  }
  0x41   : > { %3382 = vmatprep.mubr.msk.bf16.mxu0 %vm389_vm11, %v3889_v3  ;;  %3398 = vmatprep.mubr.msk.bf16.mxu1 %vm389_vm11, %v3889_v3  ;;  %v4791_v35 = vld [vmem:[#allocation2 + $0x14] ss:$8 sps:$4 sm:$0xff]   ;;  %v4796_v36 = vld [vmem:[#allocation2 + $0x10] ss:$8 sps:$4 sm:$0xff]   ;;  %v4798_v37 = vld [vmem:[#allocation2 + $0x24] ss:$8 sps:$4 sm:$0xff]  }
  0x42   : > { %s4769_s7 = scalar_lea.vmem %s5611_s1, %s3576_s30  ;;  %v4803_v38 = vld [vmem:[#allocation2 + $0x20] ss:$8 sps:$4 sm:$0xff]   ;;  %v4805_v39 = vld [vmem:[#allocation2 + $0x34] ss:$8 sps:$4 sm:$0xff]   ;;  %v4810_v40 = vld [vmem:[#allocation2 + $0x30] ss:$8 sps:$4 sm:$0xff]   ;;  %1059 = vmatprep.subr.bf16.mxu1 %v4153_v54 }
  0x43   : > { %v3860_v8 = vld [vmem:[%s4769_s7 + $0xac] ss:$12 sps:$4 sm:$0xff]   ;;  %v3862_v9 = vld [vmem:[%s4769_s7 + $0xa8] ss:$12 sps:$4 sm:$0xff]   ;;  %v3865_v24 = vld [vmem:[%s4769_s7 + $0x90] ss:$12 sps:$4 sm:$0xff]  }
  0x44   : > { %866 = vmatprep.subr.bf16.mxu0 %v3860_v8  ;;  %v3863_v19 = vld [vmem:[%s4769_s7 + $0x94] ss:$12 sps:$4 sm:$0xff]   ;;  %v3866_v26 = vld [vmem:[%s4769_s7 + $0x7c] ss:$12 sps:$4 sm:$0xff]   ;;  %v3868_v18 = vld [vmem:[%s4769_s7 + $0x78] ss:$12 sps:$4 sm:$0xff]  }
  0x45   : > { %867 = vmatpush1.bf16.msra.mxu0 %v3862_v9  ;;  %v3869_v20 = vld [vmem:[%s4769_s7 + $0x64] ss:$12 sps:$4 sm:$0xff]   ;;  %v3871_v21 = vld [vmem:[%s4769_s7 + $0x60] ss:$12 sps:$4 sm:$0xff]   ;;  %v3874_v23 = vld [vmem:[%s4769_s7 + $0x48] ss:$12 sps:$4 sm:$0xff]  }
  0x46   : > { %868 = vmatprep.subr.bf16.mxu0 %v3863_v19  ;;  %v3872_v22 = vld [vmem:[%s4769_s7 + $0x4c] ss:$12 sps:$4 sm:$0xff]   ;;  %v3875_v25 = vld [vmem:[%s4769_s7 + $0x34] ss:$12 sps:$4 sm:$0xff]   ;;  %v3877_v27 = vld [vmem:[%s4769_s7 + $0x30] ss:$12 sps:$4 sm:$0xff]  }
  0x47   : > { %v3878_v28 = vld [vmem:[%s4769_s7 + $0x1c] ss:$12 sps:$4 sm:$0xff]   ;;  %v3880_v29 = vld [vmem:[%s4769_s7 + $0x18] ss:$12 sps:$4 sm:$0xff]   ;;  %v3883_v31 = vld [vmem:[%s4769_s7] ss:$12 sps:$4 sm:$0xff]  }
  0x48   : > { %v3881_v30 = vld [vmem:[%s4769_s7 + $0x4] ss:$12 sps:$4 sm:$0xff]   ;;  %v3886_v33 = vld [vmem:[%s4769_s7 + $0xc0] ss:$12 sps:$4 sm:$0xff]   ;;  %v4819_v43 = vld [vmem:[#allocation2 + $0x54] ss:$8 sps:$4 sm:$0xff]  }
  0x49   : > { %869 = vmatpush1.bf16.msra.mxu0 %v3865_v24  ;;  %v3884_v32 = vld [vmem:[%s4769_s7 + $0xc4] ss:$12 sps:$4 sm:$0xff]   ;;  %v4817_v42 = vld [vmem:[#allocation2 + $0x40] ss:$8 sps:$4 sm:$0xff]   ;;  %v4833_v47 = vld [vmem:[#allocation2 + $0x74] ss:$8 sps:$4 sm:$0xff]  }
  0x4a   : > { %870 = vmatprep.subr.bf16.mxu0 %v3866_v26  ;;  %v4812_v41 = vld [vmem:[#allocation2 + $0x44] ss:$8 sps:$4 sm:$0xff]   ;;  %v4824_v44 = vld [vmem:[#allocation2 + $0x50] ss:$8 sps:$4 sm:$0xff]   ;;  %v4831_v46 = vld [vmem:[#allocation2 + $0x60] ss:$8 sps:$4 sm:$0xff]  }
  0x4b   : > { %v4826_v45 = vld [vmem:[#allocation2 + $0x64] ss:$8 sps:$4 sm:$0xff]   ;;  %v4838_v48 = vld [vmem:[#allocation2 + $0x70] ss:$8 sps:$4 sm:$0xff]   ;;  %v4845_v50 = vld [vmem:[#allocation2 + $0x80] ss:$8 sps:$4 sm:$0xff]  }
  0x4c   : > { %v4840_v49 = vld [vmem:[#allocation2 + $0x84] ss:$8 sps:$4 sm:$0xff]   ;;  %v4847_v51 = vld [vmem:[#allocation2 + $0x94] ss:$8 sps:$4 sm:$0xff]   ;;  %v4853_v53 = vld [vmem:[#allocation2 + $0x90] ss:$8 sps:$4 sm:$0xff]  }
  0x4d   : > { %871 = vmatpush1.bf16.msra.mxu0 %v3868_v18  ;;  %v3936_v52 = vld [vmem:[%s4769_s7 + $0xb0] ss:$12 sps:$4 sm:$0xff]   ;;  %v4856_v55 = vld [vmem:[#allocation2 + $0xa4] ss:$8 sps:$4 sm:$0xff]   ;;  %v3919_v58 = vld [vmem:[#allocation2 + $0xa0] ss:$8 sps:$4 sm:$0xff]  }
  0x4e   : > { %872 = vmatprep.subr.bf16.mxu0 %v3869_v20  ;;  %1060 = vmatpush1.bf16.msra.mxu1 %v3936_v52  ;;  %v3937_v56 = vld [vmem:[%s4769_s7 + $0x98] ss:$12 sps:$4 sm:$0xff]   ;;  %v3938_v57 = vld [vmem:[%s4769_s7 + $0x80] ss:$12 sps:$4 sm:$0xff]   ;;  %v3920_v59 = vld [vmem:[#allocation2 + $0xb4] ss:$8 sps:$4 sm:$0xff]  }
  0x4f   : > { %1061 = vmatprep.subr.bf16.mxu1 %v4153_v54  ;;  %v3939_v60 = vld [vmem:[%s4769_s7 + $0x68] ss:$12 sps:$4 sm:$0xff]   ;;  %v3940_v61 = vld [vmem:[%s4769_s7 + $0x50] ss:$12 sps:$4 sm:$0xff]   ;;  %v3923_v63 = vld [vmem:[#allocation2 + $0xc4] ss:$8 sps:$4 sm:$0xff]  }
  0x50   : > { %v3922_v62 = vld [vmem:[#allocation2 + $0xb0] ss:$8 sps:$4 sm:$0xff]   ;;  %v3942_v1 = vld [vmem:[%s4769_s7 + $0x20] ss:$12 sps:$4 sm:$0xff]   ;;  %v3926_v4 = vld [vmem:[#allocation2 + $0xd4] ss:$8 sps:$4 sm:$0xff]  }
  0x51   : > { %873 = vmatpush1.bf16.msra.mxu0 %v3871_v21  ;;  %v3941_v0 = vld [vmem:[%s4769_s7 + $0x38] ss:$12 sps:$4 sm:$0xff]   ;;  %v3925_v2 = vld [vmem:[#allocation2 + $0xc0] ss:$8 sps:$4 sm:$0xff]   ;;  %v3932_v12 = vld [vmem:[#allocation2 + $0xf4] ss:$8 sps:$4 sm:$0xff]  }
  0x52   : > { %874 = vmatprep.subr.bf16.mxu0 %v3872_v22  ;;  %1062 = vmatpush1.bf16.msra.mxu1 %v3937_v56  ;;  %v3943_v5 = vld [vmem:[%s4769_s7 + $0x8] ss:$12 sps:$4 sm:$0xff]   ;;  %v3928_v7 = vld [vmem:[#allocation2 + $0xd0] ss:$8 sps:$4 sm:$0xff]   ;;  %v3929_v10 = vld [vmem:[#allocation2 + $0xe4] ss:$8 sps:$4 sm:$0xff]  }
  0x53   : > { %1063 = vmatprep.subr.bf16.mxu1 %v4153_v54  ;;  %v3946_v6 = vld [vmem:[%s4769_s7 + $0xc8] ss:$12 sps:$4 sm:$0xff]   ;;  %v3934_v13 = vld [vmem:[#allocation2 + $0xf0] ss:$8 sps:$4 sm:$0xff]   ;;  %s3641_s8 = sshll.u32 %s4150_s29, 7  ;;  %s458_s29 = sadd.s32 1, %s4150_s29  }
  0x54   : > { %v3931_v11 = vld [vmem:[#allocation2 + $0xe0] ss:$8 sps:$4 sm:$0xff]   ;;  %s4996_s11 = scalar_lea.vmem %s5612_s2, %s3641_s8  ;;  %p455_p0 = scmp.ge.s32.totalorder %s458_s29, 4  }
  0x55   : > { %875 = vmatpush1.bf16.msra.mxu0 %v3874_v23 }
  0x56   : > { %876 = vmatprep.subr.bf16.mxu0 %v3875_v25  ;;  %1064 = vmatpush1.bf16.msra.mxu1 %v3938_v57 }
  0x57   : > { %1065 = vmatprep.subr.bf16.mxu1 %v4153_v54 }
  0x59   : > { %877 = vmatpush1.bf16.msra.mxu0 %v3877_v27 }
  0x5a   : > { %878 = vmatprep.subr.bf16.mxu0 %v3878_v28  ;;  %1066 = vmatpush1.bf16.msra.mxu1 %v3939_v60 }
  0x5b   : > { %1067 = vmatprep.subr.bf16.mxu1 %v4153_v54 }
  0x5d   : > { %879 = vmatpush1.bf16.msra.mxu0 %v3880_v29 }
  0x5e   : > { %880 = vmatprep.subr.bf16.mxu0 %v3881_v30  ;;  %1068 = vmatpush1.bf16.msra.mxu1 %v3940_v61 }
  0x5f   : > { %1069 = vmatprep.subr.bf16.mxu1 %v4153_v54 }
  0x61   : > { %881 = vmatpush1.bf16.msra.mxu0 %v3883_v31 }
  0x62   : > { %896 = vmatprep.subr.bf16.mxu0 %v3884_v32  ;;  %1070 = vmatpush1.bf16.msra.mxu1 %v3941_v0 }
  0x63   : > { %1071 = vmatprep.subr.bf16.mxu1 %v4153_v54 }
  0x65   : > { %897 = vmatpush2.bf16.msra.mxu0 %v3886_v33 }
  0x66   : > { %1072 = vmatpush1.bf16.msra.mxu1 %v3942_v1 }
  0x67   : > { %1073 = vmatprep.subr.bf16.mxu1 %v4153_v54 }
  0x68   : > { %899 = vmatmul.mubr.bf16.vlgmr.msra.gmra.mxu0 %v4789_v34 }
  0x69   : > { %3383 = vmatprep.mubr.msk.bf16.mxu0 %vm389_vm11, %v4791_v35 }
  0x6a   : > { %1074 = vmatpush1.bf16.msra.mxu1 %v3943_v5 }
  0x6b   : > { %1089 = vmatprep.subr.bf16.mxu1 %v4153_v54 }
  0x6e   : > { %1090 = vmatpush2.bf16.msra.mxu1 %v3946_v6 }
  0x70   : > { %909 = vmatmul.mubr.bf16.gmra.mxu0 %v4796_v36 }
  0x71   : > { %3384 = vmatprep.mubr.msk.bf16.mxu0 %vm389_vm11, %v4798_v37  ;;  %1092 = vmatmul.mubr.bf16.vlgmr.msra.gmra.mxu1 %v4789_v34 }
  0x72   : > { %3399 = vmatprep.mubr.msk.bf16.mxu1 %vm389_vm11, %v4791_v35 }
  0x78   : > { %919 = vmatmul.mubr.bf16.gmra.mxu0 %v4803_v38 }
  0x79   : > { %3385 = vmatprep.mubr.msk.bf16.mxu0 %vm389_vm11, %v4805_v39  ;;  %1100 = vmatmul.mubr.bf16.gmra.mxu1 %v4796_v36 }
  0x7a   : > { %3400 = vmatprep.mubr.msk.bf16.mxu1 %vm389_vm11, %v4798_v37 }
  0x80   : > { %929 = vmatmul.mubr.bf16.gmra.mxu0 %v4810_v40 }
  0x81   : > { %3386 = vmatprep.mubr.msk.bf16.mxu0 %vm389_vm11, %v4812_v41  ;;  %1108 = vmatmul.mubr.bf16.gmra.mxu1 %v4803_v38 }
  0x82   : > { %3401 = vmatprep.mubr.msk.bf16.mxu1 %vm389_vm11, %v4805_v39 }
  0x88   : > { %939 = vmatmul.mubr.bf16.gmra.mxu0 %v4817_v42 }
  0x89   : > { %3387 = vmatprep.mubr.msk.bf16.mxu0 %vm389_vm11, %v4819_v43  ;;  %1116 = vmatmul.mubr.bf16.gmra.mxu1 %v4810_v40 }
  0x8a   : > { %3402 = vmatprep.mubr.msk.bf16.mxu1 %vm389_vm11, %v4812_v41 }
  0x90   : > { %949 = vmatmul.mubr.bf16.gmra.mxu0 %v4824_v44 }
  0x91   : > { %3388 = vmatprep.mubr.msk.bf16.mxu0 %vm389_vm11, %v4826_v45  ;;  %1124 = vmatmul.mubr.bf16.gmra.mxu1 %v4817_v42 }
  0x92   : > { %3403 = vmatprep.mubr.msk.bf16.mxu1 %vm389_vm11, %v4819_v43 }
  0x98   : > { %959 = vmatmul.mubr.bf16.gmra.mxu0 %v4831_v46 }
  0x99   : > { %3389 = vmatprep.mubr.msk.bf16.mxu0 %vm389_vm11, %v4833_v47  ;;  %1132 = vmatmul.mubr.bf16.gmra.mxu1 %v4824_v44 }
  0x9a   : > { %3404 = vmatprep.mubr.msk.bf16.mxu1 %vm389_vm11, %v4826_v45 }
  0xa0   : > { %969 = vmatmul.mubr.bf16.gmra.mxu0 %v4838_v48 }
  0xa1   : > { %3390 = vmatprep.mubr.msk.bf16.mxu0 %vm389_vm11, %v4840_v49  ;;  %1140 = vmatmul.mubr.bf16.gmra.mxu1 %v4831_v46 }
  0xa2   : > { %3405 = vmatprep.mubr.msk.bf16.mxu1 %vm389_vm11, %v4833_v47 }
  0xa8   : > { %979 = vmatmul.mubr.bf16.gmra.mxu0 %v4845_v50 }
  0xa9   : > { %3391 = vmatprep.mubr.msk.bf16.mxu0 %vm389_vm11, %v4847_v51  ;;  %1148 = vmatmul.mubr.bf16.gmra.mxu1 %v4838_v48 }
  0xaa   : > { %3406 = vmatprep.mubr.msk.bf16.mxu1 %vm389_vm11, %v4840_v49 }
  0xb0   : > { %989 = vmatmul.mubr.bf16.gmra.mxu0 %v4853_v53 }
  0xb1   : > { %3392 = vmatprep.mubr.msk.bf16.mxu0 %vm389_vm11, %v4856_v55  ;;  %1156 = vmatmul.mubr.bf16.gmra.mxu1 %v4845_v50 }
  0xb2   : > { %3407 = vmatprep.mubr.msk.bf16.mxu1 %vm389_vm11, %v4847_v51 }
  0xb8   : > { %999 = vmatmul.mubr.bf16.gmra.mxu0 %v3919_v58 }
  0xb9   : > { %3393 = vmatprep.mubr.msk.bf16.mxu0 %vm389_vm11, %v3920_v59  ;;  %1164 = vmatmul.mubr.bf16.gmra.mxu1 %v4853_v53 }
  0xba   : > { %3408 = vmatprep.mubr.msk.bf16.mxu1 %vm389_vm11, %v4856_v55 }
  0xc0   : > { %1009 = vmatmul.mubr.bf16.gmra.mxu0 %v3922_v62 }
  0xc1   : > { %3394 = vmatprep.mubr.msk.bf16.mxu0 %vm389_vm11, %v3923_v63  ;;  %1172 = vmatmul.mubr.bf16.gmra.mxu1 %v3919_v58 }
  0xc2   : > { %3409 = vmatprep.mubr.msk.bf16.mxu1 %vm389_vm11, %v3920_v59 }
  0xc8   : > { %1019 = vmatmul.mubr.bf16.gmra.mxu0 %v3925_v2 }
  0xc9   : > { %3395 = vmatprep.mubr.msk.bf16.mxu0 %vm389_vm11, %v3926_v4  ;;  %1180 = vmatmul.mubr.bf16.gmra.mxu1 %v3922_v62 }
  0xca   : > { %3410 = vmatprep.mubr.msk.bf16.mxu1 %vm389_vm11, %v3923_v63 }
  0xd0   : > { %1029 = vmatmul.mubr.bf16.gmra.mxu0 %v3928_v7 }
  0xd1   : > { %3396 = vmatprep.mubr.msk.bf16.mxu0 %vm389_vm11, %v3929_v10  ;;  %1188 = vmatmul.mubr.bf16.gmra.mxu1 %v3925_v2 }
  0xd2   : > { %3411 = vmatprep.mubr.msk.bf16.mxu1 %vm389_vm11, %v3926_v4 }
  0xd8   : > { %1039 = vmatmul.mubr.bf16.gmra.mxu0 %v3931_v11 }
  0xd9   : > { %3397 = vmatprep.mubr.msk.bf16.mxu0 %vm389_vm11, %v3932_v12  ;;  %1196 = vmatmul.mubr.bf16.gmra.mxu1 %v3928_v7 }
  0xda   : > { %3412 = vmatprep.mubr.msk.bf16.mxu1 %vm389_vm11, %v3929_v10 }
  0xe0   : > { %1049 = vmatmul.mubr.bf16.gmra.mxu0 %v3934_v13 }
  0xe1   : > { %1204 = vmatmul.mubr.bf16.gmra.mxu1 %v3931_v11 }
  0xe2   : > { %3413 = vmatprep.mubr.msk.bf16.mxu1 %vm389_vm11, %v3932_v12 }
  0xe9   : > { %1212 = vmatmul.mubr.bf16.gmra.mxu1 %v3934_v13 }
 0x128   : > { %v900_v14 = vpop.f32.mrf.mxu0 }
 0x12a   : > { %v902_v15 = vpop.f32.mrf.mxu0 }
 0x12b   : > { %v3577_v16 = vpack.c.bf16 %v902_v15, %v900_v14 }
 0x12c   : > { %v904_v17 = vpop.f32.mrf.mxu0 }
 0x12d   : > { %1540 = vst [vmem:[#allocation3] sm:$0xff] %v3577_v16 }
 0x12e   : > { %v906_v3 = vpop.f32.mrf.mxu0 }
 0x12f   : > { %v3579_v8 = vpack.c.bf16 %v906_v3, %v904_v17 }
 0x130   : > { %v910_v9 = vpop.f32.mrf.mxu0 }
 0x131   : > { %1542 = vst [vmem:[#allocation3 + $0xc] sm:$0xff] %v3579_v8 }
 0x132   : > { %v912_v19 = vpop.f32.mrf.mxu0 }
 0x133   : > { %v3581_v24 = vpack.c.bf16 %v912_v19, %v910_v9 }
 0x134   : > { %v914_v26 = vpop.f32.mrf.mxu0 }
 0x135   : > { %1544 = vst [vmem:[#allocation3 + $0x18] sm:$0xff] %v3581_v24 }
 0x136   : > { %v916_v18 = vpop.f32.mrf.mxu0 }
 0x137   : > { %v3583_v20 = vpack.c.bf16 %v916_v18, %v914_v26 }
 0x138   : > { %v920_v21 = vpop.f32.mrf.mxu0  ;;  %v3935_v22 = vld [vmem:[#allocation3] ss:$12 sps:$4 sm:$0xff]  }
 0x139   : > { %1546 = vst [vmem:[#allocation3 + $0x24] sm:$0xff] %v3583_v20  ;;  %3722 = vmatprep.mubr.bf16.mxu0 %v3935_v22 }
 0x13a   : > { %v922_v23 = vpop.f32.mrf.mxu0 }
 0x13b   : > { %v3585_v25 = vpack.c.bf16 %v922_v23, %v920_v21 }
 0x13c   : > { %v924_v27 = vpop.f32.mrf.mxu0 }
 0x13d   : > { %1548 = vst [vmem:[#allocation3 + $0x30] sm:$0xff] %v3585_v25 }
 0x13e   : > { %v926_v28 = vpop.f32.mrf.mxu0 }
 0x13f   : > { %v3587_v29 = vpack.c.bf16 %v926_v28, %v924_v27 }
 0x140   : > { %v930_v30 = vpop.f32.mrf.mxu0 }
 0x141   : > { %1550 = vst [vmem:[#allocation3 + $0x3c] sm:$0xff] %v3587_v29 }
 0x142   : > { %v932_v31 = vpop.f32.mrf.mxu0 }
 0x143   : > { %v3589_v32 = vpack.c.bf16 %v932_v31, %v930_v30 }
 0x144   : > { %v934_v33 = vpop.f32.mrf.mxu0 }
 0x145   : > { %1552 = vst [vmem:[#allocation3 + $0x48] sm:$0xff] %v3589_v32  ;;  %v1093_v32 = vpop.f32.mrf.mxu1 }
 0x146   : > { %v936_v34 = vpop.f32.mrf.mxu0 }
 0x147   : > { %v3591_v35 = vpack.c.bf16 %v936_v34, %v934_v33  ;;  %v3578_v34 = vpack.c.bf16 %v1093_v32, %v1093_v32 }
 0x148   : > { %v940_v36 = vpop.f32.mrf.mxu0 }
 0x149   : > { %1554 = vst [vmem:[#allocation3 + $0x54] sm:$0xff] %v3591_v35  ;;  %v3950_v35 = vld [vmem:[#allocation3 + $0x34] ss:$12 sps:$4 sm:$0xff]   ;;  %1541 = vst [vmem:[#allocation3 + $0x8] sm:$0xf] %v3578_v34 }
 0x14a   : > { %v942_v37 = vpop.f32.mrf.mxu0 }
 0x14b   : > { %v3593_v38 = vpack.c.bf16 %v942_v37, %v940_v36  ;;  %v1095_v36 = vpop.f32.mrf.mxu1 }
 0x14c   : > { %v944_v39 = vpop.f32.mrf.mxu0 }
 0x14d   : > { %1556 = vst [vmem:[#allocation3 + $0x60] sm:$0xff] %v3593_v38 }
 0x14e   : > { %v946_v40 = vpop.f32.mrf.mxu0 }
 0x14f   : > { %v3595_v41 = vpack.c.bf16 %v946_v40, %v944_v39  ;;  %v1096_v39 = vpop.f32.mrf.mxu1 }
 0x150   : > { %v950_v42 = vpop.f32.mrf.mxu0  ;;  %v3949_v25 = vld [vmem:[#allocation3 + $0x4c] ss:$12 sps:$4 sm:$0xff]  }
 0x151   : > { %1558 = vst [vmem:[#allocation3 + $0x6c] sm:$0xff] %v3595_v41  ;;  %v3580_v41 = vpack.c.bf16 %v1096_v39, %v1096_v39 }
 0x152   : > { %v952_v43 = vpop.f32.mrf.mxu0 }
 0x153   : > { %v3597_v44 = vpack.c.bf16 %v952_v43, %v950_v42  ;;  %v1098_v42 = vpop.f32.mrf.mxu1  ;;  %1543 = vst [vmem:[#allocation3 + $0x14] sm:$0xf] %v3580_v41 }
 0x154   : > { %v954_v45 = vpop.f32.mrf.mxu0 }
 0x155   : > { %1560 = vst [vmem:[#allocation3 + $0x78] sm:$0xff] %v3597_v44 }
 0x156   : > { %v956_v46 = vpop.f32.mrf.mxu0 }
 0x157   : > { %v3599_v47 = vpack.c.bf16 %v956_v46, %v954_v45  ;;  %v1101_v45 = vpop.f32.mrf.mxu1 }
 0x158   : > { %v960_v48 = vpop.f32.mrf.mxu0  ;;  %v3948_v24 = vld [vmem:[#allocation3 + $0x64] ss:$12 sps:$4 sm:$0xff]  }
 0x159   : > { %1562 = vst [vmem:[#allocation3 + $0x84] sm:$0xff] %v3599_v47  ;;  %v3582_v47 = vpack.c.bf16 %v1101_v45, %v1101_v45 }
 0x15a   : > { %v962_v49 = vpop.f32.mrf.mxu0 }
 0x15b   : > { %v3601_v50 = vpack.c.bf16 %v962_v49, %v960_v48  ;;  %v3951_v48 = vld [vmem:[#allocation3 + $0x1c] ss:$12 sps:$4 sm:$0xff]   ;;  %v1103_v49 = vpop.f32.mrf.mxu1  ;;  %1545 = vst [vmem:[#allocation3 + $0x20] sm:$0xf] %v3582_v47 }
 0x15c   : > { %v964_v51 = vpop.f32.mrf.mxu0 }
 0x15d   : > { %1564 = vst [vmem:[#allocation3 + $0x90] sm:$0xff] %v3601_v50 }
 0x15e   : > { %v966_v52 = vpop.f32.mrf.mxu0 }
 0x15f   : > { %v3603_v53 = vpack.c.bf16 %v966_v52, %v964_v51  ;;  %v1104_v52 = vpop.f32.mrf.mxu1 }
 0x160   : > { %v970_v55 = vpop.f32.mrf.mxu0  ;;  %v3947_v15 = vld [vmem:[#allocation3 + $0x7c] ss:$12 sps:$4 sm:$0xff]  }
 0x161   : > { %1566 = vst [vmem:[#allocation3 + $0x9c] sm:$0xff] %v3603_v53 }
 0x162   : > { %v972_v56 = vpop.f32.mrf.mxu0 }
 0x163   : > { %v3605_v57 = vpack.c.bf16 %v972_v56, %v970_v55  ;;  %v3584_v55 = vpack.c.bf16 %v1104_v52, %v1104_v52  ;;  %v1106_v56 = vpop.f32.mrf.mxu1  ;;  %v3967_v52 = vld [vmem:[#allocation3 + $0x8] ss:$12 sps:$4 sm:$0xff]  }
 0x164   : > { %v974_v58 = vpop.f32.mrf.mxu0 }
 0x165   : > { %1568 = vst [vmem:[#allocation3 + $0xa8] sm:$0xff] %v3605_v57  ;;  %1547 = vst [vmem:[#allocation3 + $0x2c] sm:$0xf] %v3584_v55  ;;  %v1673_v55 = vld [vmem:[#allocation4 + $0x58] sm:$0xff] }
 0x166   : > { %v976_v59 = vpop.f32.mrf.mxu0 }
 0x167   : > { %v3607_v60 = vpack.c.bf16 %v976_v59, %v974_v58  ;;  %v1109_v59 = vpop.f32.mrf.mxu1 }
 0x168   : > { %v980_v61 = vpop.f32.mrf.mxu0  ;;  %v3945_v6 = vld [vmem:[#allocation3 + $0x94] ss:$12 sps:$4 sm:$0xff]   ;;  %v3958_v32 = vld [vmem:[#allocation3 + $0x90] ss:$12 sps:$4 sm:$0xff]  }
 0x169   : > { %1570 = vst [vmem:[#allocation3 + $0xb4] sm:$0xff] %v3607_v60 }
 0x16a   : > { %v982_v62 = vpop.f32.mrf.mxu0 }
 0x16b   : > { %v3609_v63 = vpack.c.bf16 %v982_v62, %v980_v61  ;;  %v3586_v61 = vpack.c.bf16 %v1109_v59, %v1109_v59  ;;  %v3952_v62 = vld [vmem:[#allocation3 + $0x4] ss:$12 sps:$4 sm:$0xff]  }
 0x16c   : > { %v984_v0 = vpop.f32.mrf.mxu0 }
 0x16d   : > { %1572 = vst [vmem:[#allocation3 + $0xc0] sm:$0xff] %v3609_v63  ;;  %v1111_v63 = vpop.f32.mrf.mxu1  ;;  %1549 = vst [vmem:[#allocation3 + $0x38] sm:$0xf] %v3586_v61 }
 0x16e   : > { %v986_v1 = vpop.f32.mrf.mxu0  ;;  %v1672_v63 = vld [vmem:[#allocation4] sm:$0xff] }
 0x16f   : > { %v3611_v2 = vpack.c.bf16 %v986_v1, %v984_v0 }
 0x170   : > { %v3944_v4 = vld [vmem:[#allocation3 + $0xac] ss:$12 sps:$4 sm:$0xff]   ;;  %v990_v5 = vpop.f32.mrf.mxu0 }
 0x171   : > { %1574 = vst [vmem:[#allocation3 + $0xcc] sm:$0xff] %v3611_v2  ;;  %3706 = vmatprep.subr.bf16.mxu0 %v3944_v4  ;;  %v1112_v2 = vpop.f32.mrf.mxu1 }
 0x172   : > { %v992_v7 = vpop.f32.mrf.mxu0  ;;  %3707 = vmatpush3.bf16.xpose.msra.mxu0 %v3944_v4 }
 0x173   : > { %v3613_v10 = vpack.c.bf16 %v992_v7, %v990_v5  ;;  %3708 = vmatprep.subr.bf16.mxu0 %v3945_v6  ;;  %v3588_v5 = vpack.c.bf16 %v1112_v2, %v1112_v2 }
 0x174   : > { %v994_v11 = vpop.f32.mrf.mxu0 }
 0x175   : > { %1576 = vst [vmem:[#allocation3 + $0xd8] sm:$0xff] %v3613_v10  ;;  %1551 = vst [vmem:[#allocation3 + $0x44] sm:$0xf] %v3588_v5  ;;  %v1675_v5 = vld [vmem:[#allocation4 + $0x50] sm:$0xff] }
 0x176   : > { %v996_v12 = vpop.f32.mrf.mxu0 }
 0x177   : > { %v3615_v13 = vpack.c.bf16 %v996_v12, %v994_v11 }
 0x178   : > { %v1000_v14 = vpop.f32.mrf.mxu0 }
 0x179   : > { %1578 = vst [vmem:[#allocation3 + $0xe4] sm:$0xff] %v3615_v13 }
 0x17a   : > { %v1002_v16 = vpop.f32.mrf.mxu0  ;;  %3709 = vmatpush3.bf16.xpose.msra.mxu0 %v3945_v6  ;;  %v1114_v6 = vpop.f32.mrf.mxu1 }
 0x17b   : > { %v3617_v17 = vpack.c.bf16 %v1002_v16, %v1000_v14  ;;  %3710 = vmatprep.subr.bf16.mxu0 %v3947_v15 }
 0x17c   : > { %v1004_v3 = vpop.f32.mrf.mxu0  ;;  %v1117_v11 = vpop.f32.mrf.mxu1 }
 0x17d   : > { %1580 = vst [vmem:[#allocation3 + $0xf0] sm:$0xff] %v3617_v17  ;;  %v3590_v12 = vpack.c.bf16 %v1117_v11, %v1117_v11  ;;  %v3953_v17 = vld [vmem:[#allocation3 + $0x18] ss:$12 sps:$4 sm:$0xff]  }
 0x17e   : > { %v1006_v8 = vpop.f32.mrf.mxu0  ;;  %v1119_v13 = vpop.f32.mrf.mxu1 }
 0x17f   : > { %v3619_v9 = vpack.c.bf16 %v1006_v8, %v1004_v3  ;;  %1553 = vst [vmem:[#allocation3 + $0x50] sm:$0xf] %v3590_v12  ;;  %v3954_v8 = vld [vmem:[#allocation3 + $0x30] ss:$12 sps:$4 sm:$0xff]   ;;  %v1676_v12 = vld [vmem:[#allocation4 + $0x68] sm:$0xff] }
 0x180   : > { %v1010_v19 = vpop.f32.mrf.mxu0  ;;  %v1120_v14 = vpop.f32.mrf.mxu1 }
 0x181   : > { %1582 = vst [vmem:[#allocation3 + $0xfc] sm:$0xff] %v3619_v9 }
 0x182   : > { %v1012_v26 = vpop.f32.mrf.mxu0  ;;  %3711 = vmatpush3.bf16.xpose.msra.mxu0 %v3947_v15  ;;  %v3592_v15 = vpack.c.bf16 %v1120_v14, %v1120_v14  ;;  %v1122_v16 = vpop.f32.mrf.mxu1 }
 0x183   : > { %v3621_v18 = vpack.c.bf16 %v1012_v26, %v1010_v19  ;;  %3712 = vmatprep.subr.bf16.mxu0 %v3948_v24  ;;  %v1678_v16 = vld [vmem:[#allocation4 + $0x48] sm:$0xff] }
 0x184   : > { %v1014_v20 = vpop.f32.mrf.mxu0  ;;  %1555 = vst [vmem:[#allocation3 + $0x5c] sm:$0xf] %v3592_v15  ;;  %v1125_v3 = vpop.f32.mrf.mxu1 }
 0x185   : > { %1584 = vst [vmem:[#allocation3 + $0x108] sm:$0xff] %v3621_v18  ;;  %v3594_v9 = vpack.c.bf16 %v1125_v3, %v1125_v3  ;;  %v1679_v3 = vld [vmem:[#allocation4 + $0x40] sm:$0xff] }
 0x186   : > { %v1016_v21 = vpop.f32.mrf.mxu0  ;;  %v1127_v19 = vpop.f32.mrf.mxu1 }
 0x187   : > { %v3623_v22 = vpack.c.bf16 %v1016_v21, %v1014_v20  ;;  %1557 = vst [vmem:[#allocation3 + $0x68] sm:$0xf] %v3594_v9  ;;  %v3955_v20 = vld [vmem:[#allocation3 + $0x48] ss:$12 sps:$4 sm:$0xff]  }
 0x188   : > { %v1020_v23 = vpop.f32.mrf.mxu0 }
 0x189   : > { %1586 = vst [vmem:[#allocation3 + $0x114] sm:$0xff] %v3623_v22  ;;  %v3956_v22 = vld [vmem:[#allocation3 + $0x60] ss:$12 sps:$4 sm:$0xff]  }
 0x18a   : > { %v1022_v27 = vpop.f32.mrf.mxu0  ;;  %3713 = vmatpush3.bf16.xpose.msra.mxu0 %v3948_v24  ;;  %v1128_v24 = vpop.f32.mrf.mxu1 }
 0x18b   : > { %v3625_v28 = vpack.c.bf16 %v1022_v27, %v1020_v23  ;;  %3714 = vmatprep.subr.bf16.mxu0 %v3949_v25  ;;  %v3596_v26 = vpack.c.bf16 %v1128_v24, %v1128_v24  ;;  %v3964_v49 = vld [vmem:[#allocation3 + $0x50] ss:$12 sps:$4 sm:$0xff]  }
 0x18c   : > { %v1024_v29 = vpop.f32.mrf.mxu0  ;;  %v1130_v18 = vpop.f32.mrf.mxu1  ;;  %v1681_v24 = vld [vmem:[#allocation4 + $0x10] sm:$0xff] }
 0x18d   : > { %1588 = vst [vmem:[#allocation3 + $0x120] sm:$0xff] %v3625_v28  ;;  %1559 = vst [vmem:[#allocation3 + $0x74] sm:$0xf] %v3596_v26  ;;  %v1680_v18 = vld [vmem:[#allocation4 + $0x20] sm:$0xff] }
 0x18e   : > { %v1026_v30 = vpop.f32.mrf.mxu0  ;;  %v1133_v21 = vpop.f32.mrf.mxu1 }
 0x18f   : > { %v3627_v31 = vpack.c.bf16 %v1026_v30, %v1024_v29  ;;  %v3598_v23 = vpack.c.bf16 %v1133_v21, %v1133_v21  ;;  %v3957_v30 = vld [vmem:[#allocation3 + $0x78] ss:$12 sps:$4 sm:$0xff]  }
 0x190   : > { %v1030_v33 = vpop.f32.mrf.mxu0 }
 0x191   : > { %1590 = vst [vmem:[#allocation3 + $0x12c] sm:$0xff] %v3627_v31  ;;  %1561 = vst [vmem:[#allocation3 + $0x80] sm:$0xf] %v3598_v23  ;;  %v1682_v23 = vld [vmem:[#allocation4 + $0x38] sm:$0xff] }
 0x192   : > { %v1032_v37 = vpop.f32.mrf.mxu0  ;;  %3715 = vmatpush3.bf16.xpose.msra.mxu0 %v3949_v25  ;;  %v1135_v25 = vpop.f32.mrf.mxu1 }
 0x193   : > { %v3629_v38 = vpack.c.bf16 %v1032_v37, %v1030_v33  ;;  %3716 = vmatprep.subr.bf16.mxu0 %v3950_v35 }
 0x194   : > { %v1034_v40 = vpop.f32.mrf.mxu0  ;;  %v1136_v27 = vpop.f32.mrf.mxu1 }
 0x195   : > { %1592 = vst [vmem:[#allocation3 + $0x138] sm:$0xff] %v3629_v38  ;;  %v3600_v28 = vpack.c.bf16 %v1136_v27, %v1136_v27  ;;  %v3959_v38 = vld [vmem:[#allocation3 + $0xa8] ss:$12 sps:$4 sm:$0xff]   ;;  %v1683_v27 = vld [vmem:[#allocation4 + $0x60] sm:$0xff] }
 0x196   : > { %v1036_v43 = vpop.f32.mrf.mxu0  ;;  %v1138_v29 = vpop.f32.mrf.mxu1 }
 0x197   : > { %v3631_v44 = vpack.c.bf16 %v1036_v43, %v1034_v40  ;;  %1563 = vst [vmem:[#allocation3 + $0x8c] sm:$0xf] %v3600_v28 }
 0x198   : > { %v1040_v46 = vpop.f32.mrf.mxu0  ;;  %v1141_v31 = vpop.f32.mrf.mxu1 }
 0x199   : > { %1594 = vst [vmem:[#allocation3 + $0x144] sm:$0xff] %v3631_v44  ;;  %v3602_v33 = vpack.c.bf16 %v1141_v31, %v1141_v31  ;;  %v1685_v31 = vld [vmem:[#allocation4 + $0x78] sm:$0xff] }
 0x19a   : > { %v1042_v50 = vpop.f32.mrf.mxu0  ;;  %3717 = vmatpush3.bf16.xpose.msra.mxu0 %v3950_v35  ;;  %v1143_v34 = vpop.f32.mrf.mxu1 }
 0x19b   : > { %v3633_v51 = vpack.c.bf16 %v1042_v50, %v1040_v46  ;;  %3718 = vmatprep.subr.bf16.mxu0 %v3951_v48  ;;  %1565 = vst [vmem:[#allocation3 + $0x98] sm:$0xf] %v3602_v33  ;;  %v3965_v50 = vld [vmem:[#allocation3 + $0x38] ss:$12 sps:$4 sm:$0xff]   ;;  %v4958_v33 = vld [vmem:[#allocation4 + $0x70] sm:$0xff] }
 0x19c   : > { %v1044_v53 = vpop.f32.mrf.mxu0  ;;  %v1144_v35 = vpop.f32.mrf.mxu1 }
 0x19d   : > { %1596 = vst [vmem:[#allocation3 + $0x150] sm:$0xff] %v3633_v51  ;;  %v3604_v36 = vpack.c.bf16 %v1144_v35, %v1144_v35  ;;  %v3966_v51 = vld [vmem:[#allocation3 + $0x20] ss:$12 sps:$4 sm:$0xff]  }
 0x19e   : > { %v1046_v57 = vpop.f32.mrf.mxu0  ;;  %v1146_v37 = vpop.f32.mrf.mxu1  ;;  %v3962_v47 = vld [vmem:[#allocation3 + $0x80] ss:$12 sps:$4 sm:$0xff]  }
 0x19f   : > { %v3635_v58 = vpack.c.bf16 %v1046_v57, %v1044_v53  ;;  %1567 = vst [vmem:[#allocation3 + $0xa4] sm:$0xf] %v3604_v36  ;;  %v1671_v57 = vld [vmem:[#allocation4 + $0x30] sm:$0xff]  ;;  %v4967_v37 = vld [vmem:[#allocation4 + $0x28] sm:$0xff] }
 0x1a0   : > { %v1050_v60 = vpop.f32.mrf.mxu0  ;;  %v1149_v39 = vpop.f32.mrf.mxu1 }
 0x1a1   : > { %1598 = vst [vmem:[#allocation3 + $0x15c] sm:$0xff] %v3635_v58  ;;  %v3606_v40 = vpack.c.bf16 %v1149_v39, %v1149_v39 }
 0x1a2   : > { %v1052_v0 = vpop.f32.mrf.mxu0  ;;  %3719 = vmatpush3.bf16.xpose.msra.mxu0 %v3951_v48  ;;  %v1151_v41 = vpop.f32.mrf.mxu1  ;;  %v3963_v48 = vld [vmem:[#allocation3 + $0x68] ss:$12 sps:$4 sm:$0xff]  }
 0x1a3   : > { %v3637_v1 = vpack.c.bf16 %v1052_v0, %v1050_v60  ;;  %3720 = vmatprep.subr.bf16.mxu0 %v3952_v62  ;;  %1569 = vst [vmem:[#allocation3 + $0xb0] sm:$0xf] %v3606_v40  ;;  %v1674_v60 = vld [vmem:[#allocation4 + $0x18] sm:$0xff] }
 0x1a4   : > { %v1054_v4 = vpop.f32.mrf.mxu0  ;;  %v1152_v42 = vpop.f32.mrf.mxu1 }
 0x1a5   : > { %1600 = vst [vmem:[#allocation3 + $0x168] sm:$0xff] %v3637_v1  ;;  %v3608_v43 = vpack.c.bf16 %v1152_v42, %v1152_v42 }
 0x1a6   : > { %v1056_v7 = vpop.f32.mrf.mxu0  ;;  %v1154_v44 = vpop.f32.mrf.mxu1  ;;  %v3961_v46 = vld [vmem:[#allocation3 + $0x98] ss:$12 sps:$4 sm:$0xff]  }
 0x1a7   : > { %v3639_v10 = vpack.c.bf16 %v1056_v7, %v1054_v4  ;;  %1571 = vst [vmem:[#allocation3 + $0xbc] sm:$0xf] %v3608_v43 }
 0x1a8   : > { %v1157_v39 = vpop.f32.mrf.mxu1 }
 0x1a9   : > { %1602 = vst [vmem:[#allocation3 + $0x174] sm:$0xff] %v3639_v10  ;;  %v1677_v10 = vld [vmem:[#allocation4 + $0x8] sm:$0xff]  ;;  %v3610_v40 = vpack.c.bf16 %v1157_v39, %v1157_v39 }
 0x1aa   : > { %3721 = vmatpush3.bf16.xpose.msra.mxu0 %v3952_v62  ;;  %v1159_v41 = vpop.f32.mrf.mxu1 }
 0x1ab   : > { %1573 = vst [vmem:[#allocation3 + $0xc8] sm:$0xf] %v3610_v40 }
 0x1ae   : > { %v3960_v45 = vld [vmem:[#allocation3 + $0xb0] ss:$12 sps:$4 sm:$0xff]  }
 0x1af   : > { %3738 = vmatprep.subr.bf16.mxu1 %v3960_v45 }
 0x1b0   : > { %3739 = vmatpush3.bf16.msra.mxu1 %v3960_v45  ;;  %v4918_v53 = vld [vmem:[#allocation3 + $0x16c] ss:$12 sps:$4 sm:$0xff]  }
 0x1b1   : > { %3723 = vmatmul.mubr.bf16.vlgmr.msra.gmra.mxu0 %v3953_v17  ;;  %3740 = vmatprep.subr.bf16.mxu1 %v3961_v46 }
 0x1b2   : > { %3726 = vmatprep.mubr.bf16.mxu0 %v3954_v8 }
 0x1b4   : > { %3741 = vmatpush3.bf16.msra.mxu1 %v3961_v46 }
 0x1b5   : > { %3742 = vmatprep.subr.bf16.mxu1 %v3962_v47 }
 0x1b8   : > { %3743 = vmatpush3.bf16.msra.mxu1 %v3962_v47 }
 0x1b9   : > { %3727 = vmatmul.mubr.bf16.gmra.mxu0 %v3955_v20  ;;  %3744 = vmatprep.subr.bf16.mxu1 %v3963_v48 }
 0x1ba   : > { %3730 = vmatprep.mubr.bf16.mxu0 %v3956_v22 }
 0x1bc   : > { %3745 = vmatpush3.bf16.msra.mxu1 %v3963_v48 }
 0x1bd   : > { %3746 = vmatprep.subr.bf16.mxu1 %v3964_v49 }
 0x1c0   : > { %3747 = vmatpush3.bf16.msra.mxu1 %v3964_v49 }
 0x1c1   : > { %3731 = vmatmul.mubr.bf16.gmra.mxu0 %v3957_v30  ;;  %3748 = vmatprep.subr.bf16.mxu1 %v3965_v50 }
 0x1c2   : > { %3734 = vmatprep.mubr.bf16.mxu0 %v3958_v32 }
 0x1c4   : > { %3749 = vmatpush3.bf16.msra.mxu1 %v3965_v50 }
 0x1c5   : > { %3750 = vmatprep.subr.bf16.mxu1 %v3966_v51 }
 0x1c8   : > { %3751 = vmatpush3.bf16.msra.mxu1 %v3966_v51 }
 0x1c9   : > { %3735 = vmatmul.mubr.bf16.gmra.mxu0 %v3959_v38  ;;  %3752 = vmatprep.subr.bf16.mxu1 %v3967_v52 }
 0x1ca   : > { %2345 = vmatprep.mubr.bf16.mxu0 %v4153_v54 }
 0x1cc   : > { %3753 = vmatpush3.bf16.msra.mxu1 %v3967_v52 }
 0x1cd   : > { %3770 = vmatprep.subr.bf16.mxu1 %v4918_v53 }
 0x271   : > { %v3724_v56 = vpop.f32.mrf.mxu0 }
 0x272   : > { %v4921_v58 = vadd.f32 %v3724_v56, %v1673_v55 }
 0x273   : > { %v1817_v59 = vpop.f32.mrf.mxu0 }
 0x274   : > { %v4923_v61 = vadd.f32 %v1817_v59, %v1671_v57  ;;  %1884 = vmax.xlane.f32.xlu1 %v4921_v58 }
 0x275   : > { %v3725_v62 = vpop.f32.mrf.mxu0 }
 0x276   : > { %v4926_v0 = vadd.f32 %v3725_v62, %v1674_v60  ;;  %1880 = vmax.xlane.f32.xlu0 %v4923_v61 }
 0x277   : > { %v1820_v1 = vpop.f32.mrf.mxu0 }
 0x278   : > { %v4929_v2 = vadd.f32 %v1820_v1, %v1672_v63  ;;  %1886 = vmax.xlane.f32.xlu1 %v4926_v0 }
 0x279   : > { %v3728_v4 = vpop.f32.mrf.mxu0 }
 0x27a   : > { %1882 = vmax.xlane.f32.xlu0 %v4929_v2  ;;  %v4936_v14 = vadd.f32 %v3728_v4, %v1677_v10 }
 0x27b   : > { %v1833_v6 = vpop.f32.mrf.mxu0 }
 0x27c   : > { %v4933_v7 = vadd.f32 %v1833_v6, %v1675_v5 }
 0x27d   : > { %v3729_v11 = vpop.f32.mrf.mxu0 }
 0x27e   : > { %1888 = vmax.xlane.f32.xlu0 %v4933_v7  ;;  %v4942_v9 = vadd.f32 %v3729_v11, %v1678_v16 }
 0x27f   : > { %v1836_v13 = vpop.f32.mrf.mxu0 }
 0x280   : > { %v4938_v15 = vadd.f32 %v1836_v13, %v1676_v12 }
 0x281   : > { %v3732_v17 = vpop.f32.mrf.mxu0 }
 0x282   : > { %1890 = vmax.xlane.f32.xlu1 %v4938_v15  ;;  %1892 = vmax.xlane.f32.xlu0 %v4936_v14  ;;  %v4948_v21 = vadd.f32 %v3732_v17, %v1681_v24 }
 0x283   : > { %v1849_v8 = vpop.f32.mrf.mxu0 }
 0x284   : > { %v4944_v19 = vadd.f32 %v1849_v8, %v1679_v3 }
 0x285   : > { %v3733_v26 = vpop.f32.mrf.mxu0 }
 0x286   : > { %1894 = vmax.xlane.f32.xlu1 %v4942_v9  ;;  %1896 = vmax.xlane.f32.xlu0 %v4944_v19  ;;  %v4954_v29 = vadd.f32 %v3733_v26, %v1682_v23  ;;  %v1160_v23 = vpop.f32.mrf.mxu1 }
 0x287   : > { %v1852_v20 = vpop.f32.mrf.mxu0 }
 0x288   : > { %v4950_v22 = vadd.f32 %v1852_v20, %v1680_v18 }
 0x289   : > { %v3736_v25 = vpop.f32.mrf.mxu0 }
 0x28a   : > { %1898 = vmax.xlane.f32.xlu1 %v4950_v22  ;;  %1900 = vmax.xlane.f32.xlu0 %v4948_v21  ;;  %v4962_v35 = vadd.f32 %v3736_v25, %v1685_v31 }
 0x28b   : > { %v1865_v28 = vpop.f32.mrf.mxu0 }
 0x28c   : > { %v4956_v30 = vadd.f32 %v1865_v28, %v1683_v27  ;;  %v1162_v28 = vpop.f32.mrf.mxu1 }
 0x28d   : > { %v3737_v32 = vpop.f32.mrf.mxu0  ;;  %v5002_v28 = vld [vmem:[%s4996_s11 + $0x74] ss:$8 sps:$4 sm:$0xff]  }
 0x28e   : > { %1902 = vmax.xlane.f32.xlu1 %v4954_v29  ;;  %1904 = vmax.xlane.f32.xlu0 %v4956_v30  ;;  %v4972_v38 = vadd.f32 %v3737_v32, %v4967_v37  ;;  %v1165_v39 = vpop.f32.mrf.mxu1 }
 0x28f   : > { %v1868_v34 = vpop.f32.mrf.mxu0  ;;  %2313 = vmatprep.subr.bf16.mxu0 %v5002_v28 }
 0x290   : > { %v4965_v36 = vadd.f32 %v1868_v34, %v4958_v33  ;;  %v3612_v34 = vpack.c.bf16 %v1160_v23, %v1160_v23 }
 0x292   : > { %1906 = vmax.xlane.f32.xlu1 %v4965_v36  ;;  %1908 = vmax.xlane.f32.xlu0 %v4962_v35  ;;  %1575 = vst [vmem:[#allocation3 + $0xd4] sm:$0xf] %v3612_v34  ;;  %v3975_v34 = vld [vmem:[#allocation3 + $0xdc] ss:$12 sps:$4 sm:$0xff]  }
 0x296   : > { %1910 = vmax.xlane.f32.xlu1 %v4972_v38 }
 0x2fd   : > { %v1885_v42 = vpop.xlane.xlu1 %1884 }
 0x2fe   : > { %v1914_v43 = vsub.f32 %v4921_v58, %v1885_v42 }
 0x2ff   : > { %v1881_v44 = vpop.xlane.xlu0 %1880 }
 0x300   : > { %v1912_v45 = vsub.f32 %v4923_v61, %v1881_v44  ;;  %v1932_v47 = vmul.f32 1.442695, %v1914_v43  ;;  %v1167_v44 = vpop.f32.mrf.mxu1 }
 0x301   : > { %v1887_v46 = vpop.xlane.xlu1 %1886 }
 0x302   : > { %v1928_v48 = vmul.f32 1.442695, %v1912_v45  ;;  %v1915_v49 = vsub.f32 %v4926_v0, %v1887_v46 }
 0x303   : > { %v1883_v50 = vpop.xlane.xlu0 %1882 }
 0x304   : > { %4016 = vpow2.f32 %v1928_v48  ;;  %v1934_v51 = vmul.f32 1.442695, %v1915_v49  ;;  %v1913_v52 = vsub.f32 %v4929_v2, %v1883_v50  ;;  %v3614_v48 = vpack.c.bf16 %v1165_v39, %v1165_v39  ;;  %v5010_v39 = vld [vmem:[%s4996_s11 + $0x60] ss:$8 sps:$4 sm:$0xff]  }
 0x305   : > { %4018 = vpow2.f32 %v1932_v47  ;;  %v1168_v47 = vpop.f32.mrf.mxu1 }
 0x306   : > { %v1930_v55 = vmul.f32 1.442695, %v1913_v52  ;;  %4020 = vpow2.f32 %v1934_v51  ;;  %1577 = vst [vmem:[#allocation3 + $0xe0] sm:$0xf] %v3614_v48  ;;  %v5030_v48 = vld [vmem:[%s4996_s11 + $0x34] ss:$8 sps:$4 sm:$0xff]  }
 0x307   : > { %v1889_v56 = vpop.xlane.xlu0 %1888  ;;  %v1170_v52 = vpop.f32.mrf.mxu1 }
 0x308   : > { %4022 = vpow2.f32 %v1930_v55  ;;  %v1916_v57 = vsub.f32 %v4933_v7, %v1889_v56  ;;  %v3616_v55 = vpack.c.bf16 %v1168_v47, %v1168_v47  ;;  %v5034_v52 = vld [vmem:[%s4996_s11 + $0x30] ss:$8 sps:$4 sm:$0xff]  }
 0x309   : > { %v1173_v56 = vpop.f32.mrf.mxu1 }
 0x30a   : > { %v1936_v58 = vmul.f32 1.442695, %v1916_v57  ;;  %1579 = vst [vmem:[#allocation3 + $0xec] sm:$0xf] %v3616_v55  ;;  %v5038_v55 = vld [vmem:[%s4996_s11 + $0x24] ss:$8 sps:$4 sm:$0xff]  }
 0x30b   : > { %v1891_v59 = vpop.xlane.xlu1 %1890  ;;  %v1893_v60 = vpop.xlane.xlu0 %1892 }
 0x30c   : > { %4024 = vpow2.f32 %v1936_v58  ;;  %v1917_v61 = vsub.f32 %v4938_v15, %v1891_v59  ;;  %v1918_v62 = vsub.f32 %v4936_v14, %v1893_v60  ;;  %v1175_v59 = vpop.f32.mrf.mxu1 }
 0x30d   : > { %v5048_v59 = vld [vmem:[%s4996_s11 + $0x14] ss:$8 sps:$4 sm:$0xff]  }
 0x30e   : > { %v1938_v63 = vmul.f32 1.442695, %v1917_v61  ;;  %v1940_v0 = vmul.f32 1.442695, %v1918_v62  ;;  %v1176_v60 = vpop.f32.mrf.mxu1  ;;  %v3971_v62 = vld [vmem:[#allocation3 + $0x124] ss:$12 sps:$4 sm:$0xff]  }
 0x30f   : > { %v1895_v1 = vpop.xlane.xlu1 %1894  ;;  %v1897_v4 = vpop.xlane.xlu0 %1896 }
 0x310   : > { %4026 = vpow2.f32 %v1938_v63  ;;  %v1919_v2 = vsub.f32 %v4942_v9, %v1895_v1  ;;  %v1920_v5 = vsub.f32 %v4944_v19, %v1897_v4  ;;  %v3618_v63 = vpack.c.bf16 %v1173_v56, %v1173_v56  ;;  %v1178_v4 = vpop.f32.mrf.mxu1 }
 0x311   : > { %v4017_v6 = vpop.eup %4016  ;;  %4028 = vpow2.f32 %v1940_v0  ;;  %v3979_v4 = vld [vmem:[#allocation3 + $0x108] ss:$12 sps:$4 sm:$0xff]  }
 0x312   : > { %v1942_v7 = vmul.f32 1.442695, %v1919_v2  ;;  %v1944_v10 = vmul.f32 1.442695, %v1920_v5  ;;  %1960 = vadd.xlane.f32.xlu0 %v4017_v6  ;;  %v4019_v11 = vpop.eup %4018  ;;  %1581 = vst [vmem:[#allocation3 + $0xf8] sm:$0xf] %v3618_v63  ;;  %v3620_v2 = vpack.c.bf16 %v1176_v60, %v1176_v60  ;;  %v1181_v5 = vpop.f32.mrf.mxu1 }
 0x313   : > { %v1899_v12 = vpop.xlane.xlu1 %1898  ;;  %v1901_v13 = vpop.xlane.xlu0 %1900  ;;  %v3977_v60 = vld [vmem:[#allocation3 + $0xd8] ss:$12 sps:$4 sm:$0xff]  }
 0x314   : > { %v4021_v15 = vpop.eup %4020  ;;  %4030 = vpow2.f32 %v1942_v7  ;;  %v1921_v14 = vsub.f32 %v4950_v22, %v1899_v12  ;;  %v1922_v16 = vsub.f32 %v4948_v21, %v1901_v13  ;;  %v3969_v21 = vld [vmem:[#allocation3 + $0x154] ss:$12 sps:$4 sm:$0xff]   ;;  %1583 = vst [vmem:[#allocation3 + $0x104] sm:$0xf] %v3620_v2  ;;  %v5056_v63 = vld [vmem:[%s4996_s11 + $0x4] ss:$8 sps:$4 sm:$0xff]  }
 0x315   : > { %v4023_v17 = vpop.eup %4022  ;;  %4032 = vpow2.f32 %v1944_v10  ;;  %v2025_v26 = vpack.c.bf16 %v4021_v15, %v4019_v11  ;;  %v3980_v2 = vld [vmem:[#allocation3 + $0x120] ss:$12 sps:$4 sm:$0xff]  }
 0x316   : > { %v1946_v3 = vmul.f32 1.442695, %v1921_v14  ;;  %v1948_v8 = vmul.f32 1.442695, %v1922_v16  ;;  %1964 = vadd.xlane.f32.xlu0 %v4019_v11  ;;  %1962 = vadd.xlane.f32.xlu1 %v4023_v17  ;;  %v2024_v9 = vpack.c.bf16 %v4023_v17, %v4017_v6  ;;  %v1183_v11 = vpop.f32.mrf.mxu1  ;;  %v3622_v14 = vpack.c.bf16 %v1181_v5, %v1181_v5  ;;  %v3981_v5 = vld [vmem:[#allocation3 + $0x138] ss:$12 sps:$4 sm:$0xff]  }
 0x317   : > { %v1903_v19 = vpop.xlane.xlu1 %1902  ;;  %v1905_v24 = vpop.xlane.xlu0 %1904 }
 0x318   : > { %4034 = vpow2.f32 %v1946_v3  ;;  %v1923_v18 = vsub.f32 %v4954_v29, %v1903_v19  ;;  %v1924_v20 = vsub.f32 %v4956_v30, %v1905_v24  ;;  %3754 = vmatprep.mubr.bf16.mxu1 %v2024_v9  ;;  %v1184_v12 = vpop.f32.mrf.mxu1  ;;  %v3973_v3 = vld [vmem:[#allocation3 + $0xc0] ss:$12 sps:$4 sm:$0xff]   ;;  %1585 = vst [vmem:[#allocation3 + $0x110] sm:$0xf] %v3622_v14 }
 0x319   : > { %v4025_v22 = vpop.eup %4024  ;;  %4036 = vpow2.f32 %v1948_v8  ;;  %3755 = vmatmul.mubr.bf16.vlgmr.msra.gmra.mxu1 %v2025_v26  ;;  %v3624_v8 = vpack.c.bf16 %v1184_v12, %v1184_v12  ;;  %v3974_v26 = vld [vmem:[#allocation3 + $0xf4] ss:$12 sps:$4 sm:$0xff]  }
 0x31a   : > { %v1950_v25 = vmul.f32 1.442695, %v1923_v18  ;;  %v1952_v27 = vmul.f32 1.442695, %v1924_v20  ;;  %3771 = vmatpush3.bf16.xpose.msra.mxu1 %v4918_v53  ;;  %1966 = vadd.xlane.f32.xlu1 %v4021_v15  ;;  %v3972_v15 = vld [vmem:[#allocation3 + $0x10c] ss:$12 sps:$4 sm:$0xff]   ;;  %v1186_v17 = vpop.f32.mrf.mxu1 }
 0x31b   : > { %1968 = vadd.xlane.f32.xlu0 %v4025_v22  ;;  %3772 = vmatprep.subr.bf16.mxu1 %v3969_v21  ;;  %v1907_v31 = vpop.xlane.xlu1 %1906  ;;  %v1909_v32 = vpop.xlane.xlu0 %1908  ;;  %1587 = vst [vmem:[#allocation3 + $0x11c] sm:$0xf] %v3624_v8 }
 0x31c   : > { %4038 = vpow2.f32 %v1950_v25  ;;  %v1925_v29 = vsub.f32 %v4965_v36, %v1907_v31  ;;  %v1926_v30 = vsub.f32 %v4962_v35, %v1909_v32  ;;  %v3970_v35 = vld [vmem:[#allocation3 + $0x13c] ss:$12 sps:$4 sm:$0xff]   ;;  %v1189_v9 = vpop.f32.mrf.mxu1  ;;  %v5005_v32 = vld [vmem:[%s4996_s11 + $0x64] ss:$8 sps:$4 sm:$0xff]  }
 0x31d   : > { %v4027_v40 = vpop.eup %4026  ;;  %4040 = vpow2.f32 %v1952_v27  ;;  %v3626_v18 = vpack.c.bf16 %v1189_v9, %v1189_v9  ;;  %v4999_v27 = vld [vmem:[%s4996_s11 + $0x70] ss:$8 sps:$4 sm:$0xff]  }
 0x31e   : > { %v4029_v41 = vpop.eup %4028  ;;  %v1954_v42 = vmul.f32 1.442695, %v1925_v29  ;;  %v1956_v43 = vmul.f32 1.442695, %v1926_v30  ;;  %1970 = vadd.xlane.f32.xlu1 %v4027_v40  ;;  %v2026_v53 = vpack.c.bf16 %v4027_v40, %v4025_v22  ;;  %v1191_v19 = vpop.f32.mrf.mxu1  ;;  %2314 = vmatpush1.bf16.msra.mxu0 %v4999_v27  ;;  %v5014_v40 = vld [vmem:[%s4996_s11 + $0x54] ss:$8 sps:$4 sm:$0xff]  }
 0x31f   : > { %1972 = vadd.xlane.f32.xlu0 %v4029_v41  ;;  %v1911_v45 = vpop.xlane.xlu1 %1910  ;;  %1589 = vst [vmem:[#allocation3 + $0x128] sm:$0xf] %v3626_v18  ;;  %2315 = vmatprep.subr.bf16.mxu0 %v5005_v32 }
 0x320   : > { %4042 = vpow2.f32 %v1954_v42  ;;  %v1927_v46 = vsub.f32 %v4972_v38, %v1911_v45  ;;  %3758 = vmatprep.mubr.bf16.mxu1 %v2026_v53  ;;  %v1192_v24 = vpop.f32.mrf.mxu1  ;;  %v5020_v53 = vld [vmem:[%s4996_s11 + $0x44] ss:$8 sps:$4 sm:$0xff]  }
 0x321   : > { %v4031_v36 = vpop.eup %4030  ;;  %4044 = vpow2.f32 %v1956_v43  ;;  %v3628_v23 = vpack.c.bf16 %v1192_v24, %v1192_v24  ;;  %v5017_v43 = vld [vmem:[%s4996_s11 + $0x50] ss:$8 sps:$4 sm:$0xff]  }
 0x322   : > { %v4033_v49 = vpop.eup %4032  ;;  %v1958_v50 = vmul.f32 1.442695, %v1927_v46  ;;  %3773 = vmatpush3.bf16.xpose.msra.mxu1 %v3969_v21  ;;  %1974 = vadd.xlane.f32.xlu1 %v4031_v36  ;;  %v2027_v51 = vpack.c.bf16 %v4031_v36, %v4029_v41  ;;  %v1194_v20 = vpop.f32.mrf.mxu1  ;;  %v3976_v46 = vld [vmem:[#allocation3 + $0xc4] ss:$12 sps:$4 sm:$0xff]  }
 0x323   : > { %1976 = vadd.xlane.f32.xlu0 %v4033_v49  ;;  %3774 = vmatprep.subr.bf16.mxu1 %v3970_v35  ;;  %1591 = vst [vmem:[#allocation3 + $0x134] sm:$0xf] %v3628_v23 }
 0x324   : > { %4046 = vpow2.f32 %v1958_v50  ;;  %3759 = vmatmul.mubr.bf16.gmra.mxu1 %v2027_v51  ;;  %v1197_v22 = vpop.f32.mrf.mxu1  ;;  %2316 = vmatpush1.bf16.msra.mxu0 %v5010_v39 }
 0x325   : > { %v4035_v38 = vpop.eup %4034  ;;  %v3630_v21 = vpack.c.bf16 %v1197_v22, %v1197_v22  ;;  %2317 = vmatprep.subr.bf16.mxu0 %v5014_v40 }
 0x326   : > { %v4037_v57 = vpop.eup %4036  ;;  %1978 = vadd.xlane.f32.xlu1 %v4035_v38  ;;  %v2028_v58 = vpack.c.bf16 %v4035_v38, %v4033_v49  ;;  %v1199_v25 = vpop.f32.mrf.mxu1 }
 0x327   : > { %1980 = vadd.xlane.f32.xlu0 %v4037_v57  ;;  %1593 = vst [vmem:[#allocation3 + $0x140] sm:$0xf] %v3630_v21 }
 0x328   : > { %3762 = vmatprep.mubr.bf16.mxu1 %v2028_v58  ;;  %v1200_v31 = vpop.f32.mrf.mxu1  ;;  %2318 = vmatpush1.bf16.msra.mxu0 %v5017_v43  ;;  %v5042_v58 = vld [vmem:[%s4996_s11 + $0x20] ss:$8 sps:$4 sm:$0xff]  }
 0x329   : > { %v4039_v61 = vpop.eup %4038  ;;  %v3632_v29 = vpack.c.bf16 %v1200_v31, %v1200_v31  ;;  %2319 = vmatprep.subr.bf16.mxu0 %v5020_v53 }
 0x32a   : > { %v4041_v0 = vpop.eup %4040  ;;  %3775 = vmatpush3.bf16.xpose.msra.mxu1 %v3970_v35  ;;  %1982 = vadd.xlane.f32.xlu1 %v4039_v61  ;;  %v2029_v1 = vpack.c.bf16 %v4039_v61, %v4037_v57  ;;  %v1202_v30 = vpop.f32.mrf.mxu1  ;;  %v5026_v35 = vld [vmem:[%s4996_s11 + $0x40] ss:$8 sps:$4 sm:$0xff]   ;;  %v5051_v61 = vld [vmem:[%s4996_s11 + $0x10] ss:$8 sps:$4 sm:$0xff]  }
 0x32b   : > { %1984 = vadd.xlane.f32.xlu0 %v4041_v0  ;;  %3776 = vmatprep.subr.bf16.mxu1 %v3971_v62  ;;  %1595 = vst [vmem:[#allocation3 + $0x14c] sm:$0xf] %v3632_v29 }
 0x32c   : > { %3763 = vmatmul.mubr.bf16.gmra.mxu1 %v2029_v1  ;;  %v1205_v41 = vpop.f32.mrf.mxu1  ;;  %2320 = vmatpush1.bf16.msra.mxu0 %v5026_v35 }
 0x32d   : > { %v4043_v6 = vpop.eup %4042  ;;  %v3634_v42 = vpack.c.bf16 %v1205_v41, %v1205_v41  ;;  %2321 = vmatprep.subr.bf16.mxu0 %v5030_v48 }
 0x32e   : > { %v4045_v7 = vpop.eup %4044  ;;  %1986 = vadd.xlane.f32.xlu1 %v4043_v6  ;;  %v2030_v10 = vpack.c.bf16 %v4043_v6, %v4041_v0  ;;  %v1207_v44 = vpop.f32.mrf.mxu1  ;;  %v5059_v0 = vld [vmem:[%s4996_s11] ss:$8 sps:$4 sm:$0xff]   ;;  %v3982_v6 = vld [vmem:[#allocation3 + $0x150] ss:$12 sps:$4 sm:$0xff]  }
 0x32f   : > { %1988 = vadd.xlane.f32.xlu0 %v4045_v7  ;;  %1597 = vst [vmem:[#allocation3 + $0x158] sm:$0xf] %v3634_v42 }
 0x330   : > { %3766 = vmatprep.mubr.bf16.mxu1 %v2030_v10  ;;  %v1208_v45 = vpop.f32.mrf.mxu1  ;;  %2322 = vmatpush1.bf16.msra.mxu0 %v5034_v52 }
 0x331   : > { %v4047_v13 = vpop.eup %4046  ;;  %v3636_v47 = vpack.c.bf16 %v1208_v45, %v1208_v45  ;;  %2323 = vmatprep.subr.bf16.mxu0 %v5038_v55 }
 0x332   : > { %3777 = vmatpush3.bf16.xpose.msra.mxu1 %v3971_v62  ;;  %1990 = vadd.xlane.f32.xlu1 %v4047_v13  ;;  %v2031_v16 = vpack.c.bf16 %v4047_v13, %v4045_v7  ;;  %v1210_v36 = vpop.f32.mrf.mxu1  ;;  %v3978_v62 = vld [vmem:[#allocation3 + $0xf0] ss:$12 sps:$4 sm:$0xff]   ;;  %v3983_v7 = vld [vmem:[#allocation3 + $0x168] ss:$12 sps:$4 sm:$0xff]   ;;  %v4010_v42 = vld [vmem:[#allocation3 + $0x140] ss:$12 sps:$4 sm:$0xff]  }
 0x333   : > { %3778 = vmatprep.subr.bf16.mxu1 %v3972_v15  ;;  %1599 = vst [vmem:[#allocation3 + $0x164] sm:$0xf] %v3636_v47 }
 0x334   : > { %3767 = vmatmul.mubr.bf16.gmra.mxu1 %v2031_v16  ;;  %v1213_v49 = vpop.f32.mrf.mxu1  ;;  %2324 = vmatpush1.bf16.msra.mxu0 %v5042_v58 }
 0x335   : > { %3786 = vmatprep.mubr.bf16.mxu1 %v3973_v3  ;;  %v3638_v50 = vpack.c.bf16 %v1213_v49, %v1213_v49  ;;  %2325 = vmatprep.subr.bf16.mxu0 %v5048_v59 }
 0x336   : > { %v1215_v51 = vpop.f32.mrf.mxu1 }
 0x337   : > { %1601 = vst [vmem:[#allocation3 + $0x170] sm:$0xf] %v3638_v50 }
 0x338   : > { %v1216_v56 = vpop.f32.mrf.mxu1  ;;  %2326 = vmatpush1.bf16.msra.mxu0 %v5051_v61 }
 0x339   : > { %v3640_v38 = vpack.c.bf16 %v1216_v56, %v1216_v56  ;;  %2327 = vmatprep.subr.bf16.mxu0 %v5056_v63 }
 0x33a   : > { %3779 = vmatpush3.bf16.xpose.msra.mxu1 %v3972_v15  ;;  %v1218_v57 = vpop.f32.mrf.mxu1  ;;  %v4009_v23 = vld [vmem:[#allocation3 + $0x158] ss:$12 sps:$4 sm:$0xff]  }
 0x33b   : > { %3780 = vmatprep.subr.bf16.mxu1 %v3974_v26  ;;  %1603 = vst [vmem:[#allocation3 + $0x17c] sm:$0xf] %v3640_v38  ;;  %v4012_v57 = vld [vmem:[#allocation3 + $0x110] ss:$12 sps:$4 sm:$0xff]  }
 0x33c   : > { %2328 = vmatpush1.bf16.msra.mxu0 %v5059_v0 }
 0x342   : > { %3781 = vmatpush3.bf16.xpose.msra.mxu1 %v3974_v26  ;;  %v4008_v1 = vld [vmem:[#allocation3 + $0x170] ss:$12 sps:$4 sm:$0xff]  }
 0x343   : > { %3782 = vmatprep.subr.bf16.mxu1 %v3975_v34  ;;  %3802 = vmatprep.subr.bf16.mxu0 %v4008_v1 }
 0x34a   : > { %3783 = vmatpush3.bf16.xpose.msra.mxu1 %v3975_v34 }
 0x34b   : > { %3784 = vmatprep.subr.bf16.mxu1 %v3976_v46 }
 0x352   : > { %3785 = vmatpush3.bf16.xpose.msra.mxu1 %v3976_v46  ;;  %v4011_v46 = vld [vmem:[#allocation3 + $0x128] ss:$12 sps:$4 sm:$0xff]  }
 0x353   : > { %3834 = vmatprep.subr.bf16.mxu1 %v5002_v28 }
 0x359   : > { %3787 = vmatmul.mubr.bf16.vlgmr.msra.gmra.mxu1 %v3977_v60 }
 0x35a   : > { %3790 = vmatprep.mubr.bf16.mxu1 %v3978_v62  ;;  %3842 = vmatpush1.bf16.msra.mxu1 %v4999_v27 }
 0x35b   : > { %3835 = vmatprep.subr.bf16.mxu1 %v5005_v32 }
 0x35e   : > { %3843 = vmatpush1.bf16.msra.mxu1 %v5010_v39 }
 0x35f   : > { %3836 = vmatprep.subr.bf16.mxu1 %v5014_v40 }
 0x361   : > { %3791 = vmatmul.mubr.bf16.gmra.mxu1 %v3979_v4 }
 0x362   : > { %3794 = vmatprep.mubr.bf16.mxu1 %v3980_v2  ;;  %3844 = vmatpush1.bf16.msra.mxu1 %v5017_v43 }
 0x363   : > { %3837 = vmatprep.subr.bf16.mxu1 %v5020_v53 }
 0x366   : > { %3845 = vmatpush1.bf16.msra.mxu1 %v5026_v35 }
 0x367   : > { %3838 = vmatprep.subr.bf16.mxu1 %v5030_v48 }
 0x369   : > { %3795 = vmatmul.mubr.bf16.gmra.mxu1 %v3981_v5 }
 0x36a   : > { %3798 = vmatprep.mubr.bf16.mxu1 %v3982_v6  ;;  %3846 = vmatpush1.bf16.msra.mxu1 %v5034_v52 }
 0x36b   : > { %3839 = vmatprep.subr.bf16.mxu1 %v5038_v55 }
 0x36e   : > { %3847 = vmatpush1.bf16.msra.mxu1 %v5042_v58 }
 0x36f   : > { %3840 = vmatprep.subr.bf16.mxu1 %v5048_v59 }
 0x371   : > { %3799 = vmatmul.mubr.bf16.gmra.mxu1 %v3983_v7 }
 0x372   : > { %3152 = vmatprep.mubr.bf16.mxu1 %v4153_v54  ;;  %3848 = vmatpush1.bf16.msra.mxu1 %v5051_v61 }
 0x373   : > { %3841 = vmatprep.subr.bf16.mxu1 %v5056_v63 }
 0x376   : > { %3849 = vmatpush1.bf16.msra.mxu1 %v5059_v0 }
 0x39b   : > { %v1961_v10 = vpop.xlane.xlu0 %1960 }
 0x39c   : > { %4048 = vrcp.f32 %v1961_v10 }
 0x39f   : > { %v1963_v11 = vpop.xlane.xlu1 %1962  ;;  %v1965_v13 = vpop.xlane.xlu0 %1964 }
 0x3a0   : > { %4050 = vrcp.f32 %v1963_v11 }
 0x3a3   : > { %v1967_v12 = vpop.xlane.xlu1 %1966 }
 0x3a4   : > { %4052 = vrcp.f32 %v1967_v12  ;;  %v1969_v9 = vpop.xlane.xlu0 %1968  ;;  %v4014_v12 = vld [vmem:[#allocation3 + $0xe0] ss:$12 sps:$4 sm:$0xff]  }
 0x3a5   : > { %4054 = vrcp.f32 %v1965_v13 }
 0x3a7   : > { %v1971_v16 = vpop.xlane.xlu1 %1970 }
 0x3a8   : > { %4056 = vrcp.f32 %v1971_v16  ;;  %v1973_v29 = vpop.xlane.xlu0 %1972 }
 0x3a9   : > { %v4049_v3 = vpop.eup %4048  ;;  %4058 = vrcp.f32 %v1969_v9 }
 0x3ab   : > { %v1975_v21 = vpop.xlane.xlu1 %1974 }
 0x3ac   : > { %4060 = vrcp.f32 %v1975_v21  ;;  %v1977_v51 = vpop.xlane.xlu0 %1976 }
 0x3ad   : > { %v4051_v8 = vpop.eup %4050  ;;  %4062 = vrcp.f32 %v1973_v29 }
 0x3af   : > { %v1979_v36 = vpop.xlane.xlu1 %1978 }
 0x3b0   : > { %4064 = vrcp.f32 %v1979_v36  ;;  %v1981_v7 = vpop.xlane.xlu0 %1980 }
 0x3b1   : > { %v4053_v22 = vpop.eup %4052  ;;  %4066 = vrcp.f32 %v1977_v51  ;;  %v2538_v51 = vld [vmem:[#allocation4 + $0x30] sm:$0xff] }
 0x3b2   : > { %v4055_v34 = vpop.eup %4054 }
 0x3b3   : > { %v1983_v2 = vpop.xlane.xlu1 %1982 }
 0x3b4   : > { %4068 = vrcp.f32 %v1983_v2  ;;  %v1985_v9 = vpop.xlane.xlu0 %1984 }
 0x3b5   : > { %v4057_v47 = vpop.eup %4056  ;;  %4070 = vrcp.f32 %v1981_v7 }
 0x3b6   : > { %v4059_v50 = vpop.eup %4058 }
 0x3b9   : > { %v4061_v4 = vpop.eup %4060 }
 0x3ba   : > { %v4063_v6 = vpop.eup %4062 }
 0x3bd   : > { %v4065_v16 = vpop.eup %4064 }
 0x3d9   : > { %v3756_v15 = vpop.f32.mrf.mxu1 }
 0x3da   : > { %v2179_v30 = vmul.f32 %v4055_v34, %v3756_v15 }
 0x3db   : > { %v2114_v14 = vpop.f32.mrf.mxu1 }
 0x3dc   : > { %v2177_v24 = vmul.f32 %v4049_v3, %v2114_v14  ;;  %v4015_v14 = vld [vmem:[#allocation3 + $0xc8] ss:$12 sps:$4 sm:$0xff]  }
 0x3dd   : > { %v3757_v17 = vpop.f32.mrf.mxu1 }
 0x3de   : > { %v2180_v25 = vmul.f32 %v4053_v22, %v3757_v17  ;;  %v1987_v17 = vpop.xlane.xlu1 %1986 }
 0x3df   : > { %v2117_v19 = vpop.f32.mrf.mxu1  ;;  %4072 = vrcp.f32 %v1987_v17 }
 0x3e0   : > { %v2178_v26 = vmul.f32 %v4051_v8, %v2117_v19  ;;  %v2226_v44 = vpack.c.bf16 %v2180_v25, %v2179_v30  ;;  %v4067_v8 = vpop.eup %4066  ;;  %4074 = vrcp.f32 %v1985_v9  ;;  %v1989_v25 = vpop.xlane.xlu0 %1988  ;;  %v2545_v9 = vld [vmem:[#allocation4 + $0x48] sm:$0xff] }
 0x3e2   : > { %v2225_v18 = vpack.c.bf16 %v2178_v26, %v2177_v24 }
 0x3e4   : > { %v3760_v20 = vpop.f32.mrf.mxu1  ;;  %2346 = vmatmul.mubr.bf16.vlgmr.msra.gmra.mxu0 %v2225_v18 }
 0x3e5   : > { %3803 = vmatpush3.bf16.msra.mxu0 %v4008_v1  ;;  %2355 = vmatprep.mubr.bf16.mxu0 %v4153_v54  ;;  %v4013_v1 = vld [vmem:[#allocation3 + $0xf8] ss:$12 sps:$4 sm:$0xff]   ;;  %v2183_v11 = vmul.f32 %v4063_v6, %v3760_v20  ;;  %v4069_v20 = vpop.eup %4068 }
 0x3e6   : > { %v2130_v31 = vpop.f32.mrf.mxu1  ;;  %3804 = vmatprep.subr.bf16.mxu0 %v4009_v23  ;;  %v4071_v21 = vpop.eup %4070  ;;  %v2541_v6 = vld [vmem:[#allocation4 + $0x18] sm:$0xff] }
 0x3e7   : > { %v2181_v38 = vmul.f32 %v4059_v50, %v2130_v31 }
 0x3e8   : > { %v3761_v41 = vpop.f32.mrf.mxu1 }
 0x3e9   : > { %3805 = vmatpush3.bf16.msra.mxu0 %v4009_v23  ;;  %v2184_v5 = vmul.f32 %v4061_v4, %v3761_v41  ;;  %v1991_v23 = vpop.xlane.xlu1 %1990 }
 0x3ea   : > { %3806 = vmatprep.subr.bf16.mxu0 %v4010_v42  ;;  %v2133_v45 = vpop.f32.mrf.mxu1  ;;  %4076 = vrcp.f32 %v1991_v23  ;;  %v2548_v23 = vld [vmem:[#allocation4 + $0x10] sm:$0xff] }
 0x3eb   : > { %v2182_v49 = vmul.f32 %v4057_v47, %v2133_v45  ;;  %v2228_v13 = vpack.c.bf16 %v2184_v5, %v2183_v11  ;;  %4078 = vrcp.f32 %v1989_v25 }
 0x3ec   : > { %2356 = vmatmul.mubr.bf16.gmra.mxu0 %v2226_v44  ;;  %v3764_v56 = vpop.f32.mrf.mxu1  ;;  %v4073_v41 = vpop.eup %4072 }
 0x3ed   : > { %3807 = vmatpush3.bf16.msra.mxu0 %v4010_v42  ;;  %2365 = vmatprep.mubr.bf16.mxu0 %v4153_v54  ;;  %v2227_v60 = vpack.c.bf16 %v2182_v49, %v2181_v38  ;;  %v2187_v34 = vmul.f32 %v4071_v21, %v3764_v56  ;;  %v4075_v42 = vpop.eup %4074  ;;  %v2547_v21 = vld [vmem:[#allocation4 + $0x20] sm:$0xff] }
 0x3ee   : > { %3808 = vmatprep.subr.bf16.mxu0 %v4011_v46  ;;  %v2146_v62 = vpop.f32.mrf.mxu1 }
 0x3ef   : > { %v2185_v24 = vmul.f32 %v4067_v8, %v2146_v62 }
 0x3f0   : > { %v3765_v10 = vpop.f32.mrf.mxu1 }
 0x3f1   : > { %3809 = vmatpush3.bf16.msra.mxu0 %v4011_v46  ;;  %v2188_v22 = vmul.f32 %v4069_v20, %v3765_v10  ;;  %v2542_v10 = vld [vmem:[#allocation4 + $0x50] sm:$0xff] }
 0x3f2   : > { %3810 = vmatprep.subr.bf16.mxu0 %v4012_v57  ;;  %v2149_v15 = vpop.f32.mrf.mxu1 }
 0x3f3   : > { %v2186_v3 = vmul.f32 %v4065_v16, %v2149_v15  ;;  %v2230_v29 = vpack.c.bf16 %v2188_v22, %v2187_v34  ;;  %v2544_v15 = vld [vmem:[#allocation4 + $0x8] sm:$0xff] }
 0x3f4   : > { %2366 = vmatmul.mubr.bf16.gmra.mxu0 %v2227_v60  ;;  %v3768_v19 = vpop.f32.mrf.mxu1  ;;  %v2540_v60 = vld [vmem:[#allocation4 + $0x58] sm:$0xff]  ;;  %v2543_v16 = vld [vmem:[#allocation4 + $0x68] sm:$0xff] }
 0x3f5   : > { %3811 = vmatpush3.bf16.msra.mxu0 %v4012_v57  ;;  %2375 = vmatprep.mubr.bf16.mxu0 %v4153_v54  ;;  %v2229_v26 = vpack.c.bf16 %v2186_v3, %v2185_v24  ;;  %v2546_v24 = vld [vmem:[#allocation4 + $0x40] sm:$0xff] }
 0x3f6   : > { %3812 = vmatprep.subr.bf16.mxu0 %v4013_v1  ;;  %v2162_v18 = vpop.f32.mrf.mxu1 }
 0x3f7   : > { %v2189_v44 = vmul.f32 %v4075_v42, %v2162_v18  ;;  %v4077_v46 = vpop.eup %4076 }
 0x3f8   : > { %v3769_v31 = vpop.f32.mrf.mxu1  ;;  %v4079_v36 = vpop.eup %4078 }
 0x3f9   : > { %3813 = vmatpush3.bf16.msra.mxu0 %v4013_v1  ;;  %v2192_v47 = vmul.f32 %v4077_v46, %v3769_v31  ;;  %v2191_v49 = vmul.f32 %v4079_v36, %v3768_v19  ;;  %v2539_v1 = vld [vmem:[#allocation4] sm:$0xff] }
 0x3fa   : > { %3814 = vmatprep.subr.bf16.mxu0 %v4014_v12  ;;  %v2165_v30 = vpop.f32.mrf.mxu1 }
 0x3fb   : > { %v2232_v56 = vpack.c.bf16 %v2192_v47, %v2191_v49 }
 0x3fc   : > { %2376 = vmatmul.mubr.bf16.gmra.mxu0 %v2228_v13 }
 0x3fd   : > { %3815 = vmatpush3.bf16.msra.mxu0 %v4014_v12  ;;  %2385 = vmatprep.mubr.bf16.mxu0 %v4153_v54 }
 0x3fe   : > { %3816 = vmatprep.subr.bf16.mxu0 %v4015_v14 }
 0x401   : > { %3817 = vmatpush3.bf16.msra.mxu0 %v4015_v14 }
 0x402   : > { %3100 = vmatprep.subr.bf16.mxu0 %v5002_v28  ;;  %v2190_v28 = vmul.f32 %v4073_v41, %v2165_v30  ;;  %v2550_v41 = vld [vmem:[#allocation4 + $0x60] sm:$0xff] }
 0x404   : > { %2386 = vmatmul.mubr.bf16.gmra.mxu0 %v2229_v26  ;;  %v2231_v45 = vpack.c.bf16 %v2190_v28, %v2189_v44 }
 0x405   : > { %2395 = vmatprep.mubr.bf16.mxu0 %v4153_v54 }
 0x40c   : > { %2396 = vmatmul.mubr.bf16.gmra.mxu0 %v2230_v29  ;;  %v2549_v29 = vld [vmem:[#allocation4 + $0x38] sm:$0xff] }
 0x40d   : > { %2405 = vmatprep.mubr.bf16.mxu0 %v4153_v54 }
 0x414   : > { %2406 = vmatmul.mubr.bf16.gmra.mxu0 %v2231_v45  ;;  %v2552_v45 = vld [vmem:[#allocation4 + $0x78] sm:$0xff] }
 0x415   : > { %2415 = vmatprep.mubr.bf16.mxu0 %v4153_v54 }
 0x419   : > { %v3788_v50 = vpop.f32.mrf.mxu1 }
 0x41a   : > { %v5090_v2 = vadd.f32 %v3788_v50, %v2540_v60 }
 0x41b   : > { %v2684_v38 = vpop.f32.mrf.mxu1 }
 0x41c   : > { %v5087_v57 = vadd.f32 %v2684_v38, %v2538_v51  ;;  %2416 = vmatmul.mubr.bf16.gmra.mxu0 %v2232_v56  ;;  %v2193_v51 = vld [vmem:[%s5614_s4] sm:$0xff]  ;;  %v2194_v38 = vld [vmem:[%s5614_s4 + $0x8] sm:$0xff] }
 0x41d   : > { %v3789_v62 = vpop.f32.mrf.mxu1 }
 0x41e   : > { %2747 = vmax.xlane.f32.xlu0 %v5087_v57  ;;  %v5096_v12 = vadd.f32 %v3789_v62, %v2541_v6  ;;  %v2195_v62 = vld [vmem:[%s5614_s4 + $0x10] sm:$0xff] }
 0x41f   : > { %v2687_v4 = vpop.f32.mrf.mxu1 }
 0x420   : > { %v5092_v5 = vadd.f32 %v2687_v4, %v2539_v1 }
 0x421   : > { %v3792_v7 = vpop.f32.mrf.mxu1 }
 0x422   : > { %2749 = vmax.xlane.f32.xlu1 %v5092_v5  ;;  %2751 = vmax.xlane.f32.xlu0 %v5090_v2  ;;  %v5102_v3 = vadd.f32 %v3792_v7, %v2544_v15  ;;  %v2196_v7 = vld [vmem:[%s5614_s4 + $0x18] sm:$0xff]  ;;  %v2197_v15 = vld [vmem:[%s5614_s4 + $0x20] sm:$0xff] }
 0x423   : > { %v2700_v11 = vpop.f32.mrf.mxu1 }
 0x424   : > { %v5098_v13 = vadd.f32 %v2700_v11, %v2542_v10 }
 0x425   : > { %v3793_v14 = vpop.f32.mrf.mxu1 }
 0x426   : > { %2753 = vmax.xlane.f32.xlu1 %v5096_v12  ;;  %2755 = vmax.xlane.f32.xlu0 %v5098_v13  ;;  %v5108_v18 = vadd.f32 %v3793_v14, %v2545_v9 }
 0x427   : > { %v2703_v17 = vpop.f32.mrf.mxu1 }
 0x428   : > { %v5104_v8 = vadd.f32 %v2703_v17, %v2543_v16 }
 0x429   : > { %v3796_v19 = vpop.f32.mrf.mxu1 }
 0x42a   : > { %2757 = vmax.xlane.f32.xlu1 %v5104_v8  ;;  %2759 = vmax.xlane.f32.xlu0 %v5102_v3  ;;  %v5114_v31 = vadd.f32 %v3796_v19, %v2548_v23 }
 0x42b   : > { %v2716_v26 = vpop.f32.mrf.mxu1 }
 0x42c   : > { %v5110_v20 = vadd.f32 %v2716_v26, %v2546_v24  ;;  %v2198_v26 = vld [vmem:[%s5614_s4 + $0x28] sm:$0xff] }
 0x42d   : > { %v3797_v22 = vpop.f32.mrf.mxu1 }
 0x42e   : > { %2761 = vmax.xlane.f32.xlu1 %v5108_v18  ;;  %2763 = vmax.xlane.f32.xlu0 %v5110_v20  ;;  %v5120_v42 = vadd.f32 %v3797_v22, %v2549_v29 }
 0x42f   : > { %v2719_v25 = vpop.f32.mrf.mxu1 }
 0x430   : > { %v5116_v34 = vadd.f32 %v2719_v25, %v2547_v21  ;;  %v2199_v25 = vld [vmem:[%s5614_s4 + $0x30] sm:$0xff] }
 0x431   : > { %v3800_v30 = vpop.f32.mrf.mxu1 }
 0x432   : > { %2765 = vmax.xlane.f32.xlu1 %v5116_v34  ;;  %2767 = vmax.xlane.f32.xlu0 %v5114_v31  ;;  %v5126_v36 = vadd.f32 %v3800_v30, %v2552_v45 }
 0x433   : > { %v2732_v28 = vpop.f32.mrf.mxu1 }
 0x434   : > { %v5122_v44 = vadd.f32 %v2732_v28, %v2550_v41 }
 0x435   : > { %v3801_v46 = vpop.f32.mrf.mxu1 }
 0x436   : > { %2769 = vmax.xlane.f32.xlu1 %v5120_v42  ;;  %2771 = vmax.xlane.f32.xlu0 %v5122_v44  ;;  %v5134_v50 = vadd.f32 %v3801_v46, %v4967_v37  ;;  %v2200_v46 = vld [vmem:[%s5614_s4 + $0x38] sm:$0xff] }
 0x437   : > { %v2735_v47 = vpop.f32.mrf.mxu1 }
 0x438   : > { %v5129_v49 = vadd.f32 %v2735_v47, %v4958_v33 }
 0x43a   : > { %2773 = vmax.xlane.f32.xlu1 %v5129_v49  ;;  %2775 = vmax.xlane.f32.xlu0 %v5126_v36 }
 0x43e   : > { %2777 = vmax.xlane.f32.xlu1 %v5134_v50 }
 0x4a4   : > { %v2347_v56 = vpop.f32.mrf.mxu0 }
 0x4a5   : > { %v2426_v33 = vadd.f32 %v2347_v56, %v2193_v51 }
 0x4a6   : > { %v2349_v60 = vpop.f32.mrf.mxu0 }
 0x4a7   : > { %2458 = vst [vmem:[%s5614_s4] sm:$0xff] %v2426_v33  ;;  %v2427_v37 = vadd.f32 %v2349_v60, %v2194_v38  ;;  %v2748_v1 = vpop.xlane.xlu0 %2747 }
 0x4a8   : > { %v2779_v4 = vsub.f32 %v5087_v57, %v2748_v1  ;;  %v2351_v6 = vpop.f32.mrf.mxu0 }
 0x4a9   : > { %2459 = vst.msk [vmem:[%s5614_s4 + $0x8] sm:$0xff] %vm389_vm11, %v2427_v37  ;;  %v2428_v10 = vadd.f32 %v2351_v6, %v2195_v62 }
 0x4aa   : > { %v2353_v11 = vpop.f32.mrf.mxu0  ;;  %v2795_v14 = vmul.f32 1.442695, %v2779_v4  ;;  %v2202_v4 = vld [vmem:[%s5614_s4 + $0x48] sm:$0xff] }
 0x4ab   : > { %2460 = vst [vmem:[%s5614_s4 + $0x10] sm:$0xff] %v2428_v10  ;;  %v2429_v57 = vadd.f32 %v2353_v11, %v2196_v7  ;;  %v2750_v16 = vpop.xlane.xlu1 %2749  ;;  %v2752_v17 = vpop.xlane.xlu0 %2751 }
 0x4ac   : > { %v2780_v9 = vsub.f32 %v5092_v5, %v2750_v16  ;;  %v2781_v19 = vsub.f32 %v5090_v2, %v2752_v17  ;;  %v2357_v24 = vpop.f32.mrf.mxu0  ;;  %4080 = vpow2.f32 %v2795_v14 }
 0x4ad   : > { %2461 = vst.msk [vmem:[%s5614_s4 + $0x18] sm:$0xff] %vm389_vm11, %v2429_v57  ;;  %v2430_v23 = vadd.f32 %v2357_v24, %v2197_v15 }
 0x4ae   : > { %v2797_v22 = vmul.f32 1.442695, %v2780_v9  ;;  %v2359_v21 = vpop.f32.mrf.mxu0  ;;  %v2799_v5 = vmul.f32 1.442695, %v2781_v19  ;;  %v2204_v9 = vld [vmem:[%s5614_s4 + $0x58] sm:$0xff] }
 0x4af   : > { %2462 = vst [vmem:[%s5614_s4 + $0x20] sm:$0xff] %v2430_v23  ;;  %v2431_v2 = vadd.f32 %v2359_v21, %v2198_v26  ;;  %v2754_v29 = vpop.xlane.xlu1 %2753  ;;  %v2756_v30 = vpop.xlane.xlu0 %2755 }
 0x4b0   : > { %4082 = vpow2.f32 %v2797_v22  ;;  %v2782_v41 = vsub.f32 %v5096_v12, %v2754_v29  ;;  %v2783_v28 = vsub.f32 %v5098_v13, %v2756_v30  ;;  %v2361_v45 = vpop.f32.mrf.mxu0  ;;  %v2201_v12 = vld [vmem:[%s5614_s4 + $0x40] sm:$0xff]  ;;  %v2206_v30 = vld [vmem:[%s5614_s4 + $0x68] sm:$0xff] }
 0x4b1   : > { %2463 = vst.msk [vmem:[%s5614_s4 + $0x28] sm:$0xff] %vm389_vm11, %v2431_v2  ;;  %v2432_v47 = vadd.f32 %v2361_v45, %v2199_v25  ;;  %4084 = vpow2.f32 %v2799_v5 }
 0x4b2   : > { %v2801_v51 = vmul.f32 1.442695, %v2782_v41  ;;  %v2803_v56 = vmul.f32 1.442695, %v2783_v28  ;;  %v2363_v38 = vpop.f32.mrf.mxu0 }
 0x4b3   : > { %2464 = vst [vmem:[%s5614_s4 + $0x30] sm:$0xff] %v2432_v47  ;;  %v2433_v13 = vadd.f32 %v2363_v38, %v2200_v46  ;;  %v2758_v33 = vpop.xlane.xlu1 %2757  ;;  %v2760_v60 = vpop.xlane.xlu0 %2759 }
 0x4b4   : > { %4086 = vpow2.f32 %v2801_v51  ;;  %v2784_v62 = vsub.f32 %v5104_v8, %v2758_v33  ;;  %v2785_v37 = vsub.f32 %v5102_v3, %v2760_v60  ;;  %v2367_v1 = vpop.f32.mrf.mxu0  ;;  %v2203_v8 = vld [vmem:[%s5614_s4 + $0x50] sm:$0xff] }
 0x4b5   : > { %4088 = vpow2.f32 %v2803_v56  ;;  %2465 = vst.msk [vmem:[%s5614_s4 + $0x38] sm:$0xff] %vm389_vm11, %v2433_v13  ;;  %v2434_v6 = vadd.f32 %v2367_v1, %v2201_v12 }
 0x4b6   : > { %v2805_v7 = vmul.f32 1.442695, %v2784_v62  ;;  %v2807_v10 = vmul.f32 1.442695, %v2785_v37  ;;  %v2369_v11 = vpop.f32.mrf.mxu0  ;;  %v2208_v62 = vld [vmem:[%s5614_s4 + $0x78] sm:$0xff] }
 0x4b7   : > { %2466 = vst [vmem:[%s5614_s4 + $0x40] sm:$0xff] %v2434_v6  ;;  %v2435_v3 = vadd.f32 %v2369_v11, %v2202_v4  ;;  %v2762_v15 = vpop.xlane.xlu1 %2761  ;;  %v2764_v14 = vpop.xlane.xlu0 %2763 }
 0x4b8   : > { %4090 = vpow2.f32 %v2805_v7  ;;  %v2786_v57 = vsub.f32 %v5108_v18, %v2762_v15  ;;  %v2787_v16 = vsub.f32 %v5110_v20, %v2764_v14  ;;  %v2371_v17 = vpop.f32.mrf.mxu0  ;;  %v2205_v18 = vld [vmem:[%s5614_s4 + $0x60] sm:$0xff] }
 0x4b9   : > { %4092 = vpow2.f32 %v2807_v10  ;;  %2467 = vst.msk [vmem:[%s5614_s4 + $0x48] sm:$0xff] %vm389_vm11, %v2435_v3  ;;  %v2436_v19 = vadd.f32 %v2371_v17, %v2203_v8  ;;  %v5223_v25 = vpop.eup %4080  ;;  %v2209_v7 = vld [vmem:[%s5614_s4 + $0x80] sm:$0xff] }
 0x4ba   : > { %v2809_v24 = vmul.f32 1.442695, %v2786_v57  ;;  %v2811_v26 = vmul.f32 1.442695, %v2787_v16  ;;  %v2373_v23 = vpop.f32.mrf.mxu0  ;;  %v2210_v16 = vld [vmem:[%s5614_s4 + $0x88] sm:$0xff] }
 0x4bb   : > { %2468 = vst [vmem:[%s5614_s4 + $0x50] sm:$0xff] %v2436_v19  ;;  %v2437_v20 = vadd.f32 %v2373_v23, %v2204_v9  ;;  %v2766_v22 = vpop.xlane.xlu1 %2765  ;;  %v2768_v21 = vpop.xlane.xlu0 %2767 }
 0x4bc   : > { %4094 = vpow2.f32 %v2809_v24  ;;  %v2788_v5 = vsub.f32 %v5116_v34, %v2766_v22  ;;  %v2789_v2 = vsub.f32 %v5114_v31, %v2768_v21  ;;  %v2377_v29 = vpop.f32.mrf.mxu0  ;;  %v2207_v34 = vld [vmem:[%s5614_s4 + $0x70] sm:$0xff]  ;;  %v2212_v21 = vld [vmem:[%s5614_s4 + $0x98] sm:$0xff] }
 0x4bd   : > { %v5230_v41 = vpop.eup %4082  ;;  %4096 = vpow2.f32 %v2811_v26  ;;  %2469 = vst.msk [vmem:[%s5614_s4 + $0x58] sm:$0xff] %vm389_vm11, %v2437_v20  ;;  %v2438_v28 = vadd.f32 %v2377_v29, %v2205_v18  ;;  %v2211_v26 = vld [vmem:[%s5614_s4 + $0x90] sm:$0xff] }
 0x4be   : > { %v2813_v45 = vmul.f32 1.442695, %v2788_v5  ;;  %v2815_v46 = vmul.f32 1.442695, %v2789_v2  ;;  %v2379_v47 = vpop.f32.mrf.mxu0  ;;  %v2891_v31 = vpack.c.bf16 %v5230_v41, %v5223_v25  ;;  %v5244_v12 = vpop.eup %4084 }
 0x4bf   : > { %2470 = vst [vmem:[%s5614_s4 + $0x60] sm:$0xff] %v2438_v28  ;;  %v2439_v51 = vadd.f32 %v2379_v47, %v2206_v30  ;;  %v2770_v56 = vpop.xlane.xlu1 %2769  ;;  %v2772_v38 = vpop.xlane.xlu0 %2771  ;;  %v2213_v28 = vld [vmem:[%s5614_s4 + $0xa0] sm:$0xff] }
 0x4c0   : > { %4098 = vpow2.f32 %v2813_v45  ;;  %v2790_v13 = vsub.f32 %v5120_v42, %v2770_v56  ;;  %v2791_v33 = vsub.f32 %v5122_v44, %v2772_v38  ;;  %3818 = vmatprep.mubr.bf16.mxu0 %v2891_v31  ;;  %v2381_v60 = vpop.f32.mrf.mxu0  ;;  %v2215_v56 = vld [vmem:[%s5614_s4 + $0xb0] sm:$0xff] }
 0x4c1   : > { %v5251_v37 = vpop.eup %4086  ;;  %4100 = vpow2.f32 %v2815_v46  ;;  %2471 = vst.msk [vmem:[%s5614_s4 + $0x68] sm:$0xff] %vm389_vm11, %v2439_v51  ;;  %v2440_v1 = vadd.f32 %v2381_v60, %v2207_v34  ;;  %v2214_v46 = vld [vmem:[%s5614_s4 + $0xa8] sm:$0xff] }
 0x4c2   : > { %v4089_v4 = vpop.eup %4088  ;;  %v2892_v42 = vpack.c.bf16 %v5251_v37, %v5244_v12  ;;  %v2817_v44 = vmul.f32 1.442695, %v2790_v13  ;;  %v2383_v6 = vpop.f32.mrf.mxu0  ;;  %v2819_v10 = vmul.f32 1.442695, %v2791_v33 }
 0x4c3   : > { %2472 = vst [vmem:[%s5614_s4 + $0x70] sm:$0xff] %v2440_v1  ;;  %2835 = vadd.xlane.f32.xlu0 %v4089_v4  ;;  %v2441_v11 = vadd.f32 %v2383_v6, %v2208_v62  ;;  %v2774_v8 = vpop.xlane.xlu1 %2773  ;;  %v2776_v3 = vpop.xlane.xlu0 %2775  ;;  %v2217_v1 = vld [vmem:[%s5614_s4 + $0xc0] sm:$0xff] }
 0x4c4   : > { %4102 = vpow2.f32 %v2817_v44  ;;  %v2792_v15 = vsub.f32 %v5129_v49, %v2774_v8  ;;  %v2793_v14 = vsub.f32 %v5126_v36, %v2776_v3  ;;  %3819 = vmatmul.mubr.bf16.vlgmr.msra.gmra.mxu0 %v2892_v42  ;;  %v2387_v57 = vpop.f32.mrf.mxu0 }
 0x4c5   : > { %v4091_v17 = vpop.eup %4090  ;;  %2473 = vst.msk [vmem:[%s5614_s4 + $0x78] sm:$0xff] %vm389_vm11, %v2441_v11  ;;  %v2442_v9 = vadd.f32 %v2387_v57, %v2209_v7  ;;  %3101 = vmatpush1.bf16.msra.mxu0 %v4999_v27  ;;  %4104 = vpow2.f32 %v2819_v10  ;;  %v2219_v10 = vld [vmem:[%s5614_s4 + $0xd0] sm:$0xff]  ;;  %v2221_v57 = vld [vmem:[%s5614_s4 + $0xe0] sm:$0xff] }
 0x4c6   : > { %v4093_v19 = vpop.eup %4092  ;;  %v2821_v24 = vmul.f32 1.442695, %v2792_v15  ;;  %2837 = vadd.xlane.f32.xlu1 %v4091_v17  ;;  %v2389_v49 = vpop.f32.mrf.mxu0  ;;  %v2893_v36 = vpack.c.bf16 %v4091_v17, %v4089_v4  ;;  %3102 = vmatprep.subr.bf16.mxu0 %v5005_v32  ;;  %v2823_v23 = vmul.f32 1.442695, %v2793_v14 }
 0x4c7   : > { %2474 = vst [vmem:[%s5614_s4 + $0x80] sm:$0xff] %v2442_v9  ;;  %2839 = vadd.xlane.f32.xlu0 %v4093_v19  ;;  %v2443_v18 = vadd.f32 %v2389_v49, %v2210_v16  ;;  %v2778_v27 = vpop.xlane.xlu1 %2777 }
 0x4c8   : > { %4106 = vpow2.f32 %v2821_v24  ;;  %v2794_v20 = vsub.f32 %v5134_v50, %v2778_v27  ;;  %3822 = vmatprep.mubr.bf16.mxu0 %v2893_v36  ;;  %v2391_v22 = vpop.f32.mrf.mxu0 }
 0x4c9   : > { %v4095_v5 = vpop.eup %4094  ;;  %2475 = vst.msk [vmem:[%s5614_s4 + $0x88] sm:$0xff] %vm389_vm11, %v2443_v18  ;;  %v2444_v32 = vadd.f32 %v2391_v22, %v2211_v26  ;;  %3103 = vmatpush1.bf16.msra.mxu0 %v5010_v39  ;;  %4108 = vpow2.f32 %v2823_v23 }
 0x4ca   : > { %v4097_v2 = vpop.eup %4096  ;;  %v2825_v29 = vmul.f32 1.442695, %v2794_v20  ;;  %2841 = vadd.xlane.f32.xlu1 %v4095_v5  ;;  %v2393_v30 = vpop.f32.mrf.mxu0  ;;  %v2894_v50 = vpack.c.bf16 %v4095_v5, %v4093_v19  ;;  %3104 = vmatprep.subr.bf16.mxu0 %v5014_v40 }
 0x4cb   : > { %2476 = vst [vmem:[%s5614_s4 + $0x90] sm:$0xff] %v2444_v32  ;;  %2843 = vadd.xlane.f32.xlu0 %v4097_v2  ;;  %v2445_v45 = vadd.f32 %v2393_v30, %v2212_v21 }
 0x4cc   : > { %4110 = vpow2.f32 %v2825_v29  ;;  %3823 = vmatmul.mubr.bf16.gmra.mxu0 %v2894_v50  ;;  %v2397_v39 = vpop.f32.mrf.mxu0 }
 0x4cd   : > { %v4099_v47 = vpop.eup %4098  ;;  %2477 = vst.msk [vmem:[%s5614_s4 + $0x98] sm:$0xff] %vm389_vm11, %v2445_v45  ;;  %v2446_v40 = vadd.f32 %v2397_v39, %v2213_v28  ;;  %3105 = vmatpush1.bf16.msra.mxu0 %v5017_v43  ;;  %v2216_v43 = vld [vmem:[%s5614_s4 + $0xb8] sm:$0xff] }
 0x4ce   : > { %v4101_v31 = vpop.eup %4100  ;;  %2845 = vadd.xlane.f32.xlu1 %v4099_v47  ;;  %v2399_v34 = vpop.f32.mrf.mxu0  ;;  %v2895_v51 = vpack.c.bf16 %v4099_v47, %v4097_v2  ;;  %3106 = vmatprep.subr.bf16.mxu0 %v5020_v53 }
 0x4cf   : > { %2478 = vst [vmem:[%s5614_s4 + $0xa0] sm:$0xff] %v2446_v40  ;;  %2847 = vadd.xlane.f32.xlu0 %v4101_v31  ;;  %v2447_v38 = vadd.f32 %v2399_v34, %v2214_v46 }
 0x4d0   : > { %3826 = vmatprep.mubr.bf16.mxu0 %v2895_v51  ;;  %v2401_v13 = vpop.f32.mrf.mxu0 }
 0x4d1   : > { %v4103_v33 = vpop.eup %4102  ;;  %2479 = vst.msk [vmem:[%s5614_s4 + $0xa8] sm:$0xff] %vm389_vm11, %v2447_v38  ;;  %v2448_v60 = vadd.f32 %v2401_v13, %v2215_v56  ;;  %3107 = vmatpush1.bf16.msra.mxu0 %v5026_v35  ;;  %v2218_v35 = vld [vmem:[%s5614_s4 + $0xc8] sm:$0xff] }
 0x4d2   : > { %2849 = vadd.xlane.f32.xlu1 %v4103_v33  ;;  %v2403_v53 = vpop.f32.mrf.mxu0  ;;  %v2896_v62 = vpack.c.bf16 %v4103_v33, %v4101_v31  ;;  %3108 = vmatprep.subr.bf16.mxu0 %v5030_v48  ;;  %v4105_v42 = vpop.eup %4104 }
 0x4d3   : > { %2480 = vst [vmem:[%s5614_s4 + $0xb0] sm:$0xff] %v2448_v60  ;;  %2827 = vadd.xlane.f32.xlu0 %v5223_v25  ;;  %v2449_v4 = vadd.f32 %v2403_v53, %v2216_v43 }
 0x4d4   : > { %3827 = vmatmul.mubr.bf16.gmra.mxu0 %v2896_v62  ;;  %v2407_v44 = vpop.f32.mrf.mxu0 }
 0x4d5   : > { %v4107_v6 = vpop.eup %4106  ;;  %2481 = vst.msk [vmem:[%s5614_s4 + $0xb8] sm:$0xff] %vm389_vm11, %v2449_v4  ;;  %v2450_v48 = vadd.f32 %v2407_v44, %v2217_v1  ;;  %3109 = vmatpush1.bf16.msra.mxu0 %v5034_v52  ;;  %v2220_v52 = vld [vmem:[%s5614_s4 + $0xd8] sm:$0xff] }
 0x4d6   : > { %2829 = vadd.xlane.f32.xlu1 %v5230_v41  ;;  %v2409_v25 = vpop.f32.mrf.mxu0  ;;  %v2897_v7 = vpack.c.bf16 %v4107_v6, %v4105_v42  ;;  %3110 = vmatprep.subr.bf16.mxu0 %v5038_v55  ;;  %v4109_v8 = vpop.eup %4108 }
 0x4d7   : > { %2482 = vst [vmem:[%s5614_s4 + $0xc0] sm:$0xff] %v2450_v48  ;;  %2851 = vadd.xlane.f32.xlu0 %v4105_v42  ;;  %v2451_v11 = vadd.f32 %v2409_v25, %v2218_v35 }
 0x4d8   : > { %3830 = vmatprep.mubr.bf16.mxu0 %v2897_v7  ;;  %v2411_v3 = vpop.f32.mrf.mxu0 }
 0x4d9   : > { %v4111_v41 = vpop.eup %4110  ;;  %2483 = vst.msk [vmem:[%s5614_s4 + $0xc8] sm:$0xff] %vm389_vm11, %v2451_v11  ;;  %v2452_v55 = vadd.f32 %v2411_v3, %v2219_v10  ;;  %3111 = vmatpush1.bf16.msra.mxu0 %v5042_v58  ;;  %v2222_v58 = vld [vmem:[%s5614_s4 + $0xe8] sm:$0xff] }
 0x4da   : > { %2853 = vadd.xlane.f32.xlu1 %v4107_v6  ;;  %v2413_v15 = vpop.f32.mrf.mxu0  ;;  %v2898_v14 = vpack.c.bf16 %v4111_v41, %v4109_v8  ;;  %3112 = vmatprep.subr.bf16.mxu0 %v5048_v59 }
 0x4db   : > { %2484 = vst [vmem:[%s5614_s4 + $0xd0] sm:$0xff] %v2452_v55  ;;  %2831 = vadd.xlane.f32.xlu0 %v5244_v12  ;;  %v2453_v16 = vadd.f32 %v2413_v15, %v2220_v52  ;;  %v2223_v12 = vld [vmem:[%s5614_s4 + $0xf0] sm:$0xff] }
 0x4dc   : > { %3831 = vmatmul.mubr.bf16.gmra.mxu0 %v2898_v14  ;;  %v2417_v17 = vpop.f32.mrf.mxu0 }
 0x4dd   : > { %2485 = vst.msk [vmem:[%s5614_s4 + $0xd8] sm:$0xff] %vm389_vm11, %v2453_v16  ;;  %v2454_v9 = vadd.f32 %v2417_v17, %v2221_v57  ;;  %3113 = vmatpush1.bf16.msra.mxu0 %v5051_v61  ;;  %3132 = vmatprep.mubr.bf16.mxu0 %v4153_v54  ;;  %v2224_v61 = vld [vmem:[%s5614_s4 + $0xf8] sm:$0xff] }
 0x4de   : > { %2833 = vadd.xlane.f32.xlu1 %v5251_v37  ;;  %v2419_v59 = vpop.f32.mrf.mxu0  ;;  %3114 = vmatprep.subr.bf16.mxu0 %v5056_v63 }
 0x4df   : > { %2486 = vst [vmem:[%s5614_s4 + $0xe0] sm:$0xff] %v2454_v9  ;;  %2855 = vadd.xlane.f32.xlu0 %v4109_v8  ;;  %v2455_v19 = vadd.f32 %v2419_v59, %v2222_v58 }
 0x4e0   : > { %v2421_v24 = vpop.f32.mrf.mxu0 }
 0x4e1   : > { %2487 = vst.msk [vmem:[%s5614_s4 + $0xe8] sm:$0xff] %vm389_vm11, %v2455_v19  ;;  %v2456_v37 = vadd.f32 %v2421_v24, %v2223_v12  ;;  %3115 = vmatpush1.bf16.msra.mxu0 %v5059_v0 }
 0x4e2   : > { %2857 = vadd.xlane.f32.xlu1 %v4111_v41  ;;  %v2423_v63 = vpop.f32.mrf.mxu0 }
 0x4e3   : > { %2488 = vst [vmem:[%s5614_s4 + $0xf0] sm:$0xff] %v2456_v37  ;;  %v2457_v49 = vadd.f32 %v2423_v63, %v2224_v61 }
 0x4e5   : > { %2489 = vst.msk [vmem:[%s5614_s4 + $0xf8] sm:$0xff] %vm389_vm11, %v2457_v49 }
 0x54c   : > { %v2836_v26 = vpop.xlane.xlu0 %2835 }
 0x54f   : > { %v2838_v36 = vpop.xlane.xlu1 %2837 }
 0x550   : > { %v2840_v18 = vpop.xlane.xlu0 %2839 }
 0x553   : > { %v2842_v23 = vpop.xlane.xlu1 %2841 }
 0x554   : > { %v2844_v20 = vpop.xlane.xlu0 %2843 }
 0x557   : > { %v2846_v27 = vpop.xlane.xlu1 %2845 }
 0x558   : > { %v2848_v0 = vpop.xlane.xlu0 %2847 }
 0x55b   : > { %v2850_v22 = vpop.xlane.xlu1 %2849 }
 0x55c   : > { %v2828_v5 = vpop.xlane.xlu0 %2827 }
 0x55d   : > { %4112 = vrcp.f32 %v2828_v5  ;;  %v3060_v5 = vld [vmem:[%s5614_s4 + $0x100] sm:$0xff] }
 0x55f   : > { %v2830_v21 = vpop.xlane.xlu1 %2829 }
 0x560   : > { %v2852_v2 = vpop.xlane.xlu0 %2851  ;;  %4114 = vrcp.f32 %v2830_v21 }
 0x561   : > { %4116 = vrcp.f32 %v2836_v26 }
 0x563   : > { %v2854_v32 = vpop.xlane.xlu1 %2853 }
 0x564   : > { %v2832_v30 = vpop.xlane.xlu0 %2831 }
 0x567   : > { %v2834_v29 = vpop.xlane.xlu1 %2833 }
 0x568   : > { %4118 = vrcp.f32 %v2834_v29  ;;  %v2856_v19 = vpop.xlane.xlu0 %2855 }
 0x569   : > { %4120 = vrcp.f32 %v2838_v36 }
 0x56a   : > { %4122 = vrcp.f32 %v2832_v30  ;;  %v4113_v39 = vpop.eup %4112 }
 0x56b   : > { %4124 = vrcp.f32 %v2842_v23  ;;  %v2858_v9 = vpop.xlane.xlu1 %2857 }
 0x56c   : > { %4126 = vrcp.f32 %v2840_v18 }
 0x56d   : > { %v4115_v46 = vpop.eup %4114  ;;  %4128 = vrcp.f32 %v2846_v27 }
 0x56e   : > { %v4117_v38 = vpop.eup %4116  ;;  %4130 = vrcp.f32 %v2844_v20 }
 0x56f   : > { %4132 = vrcp.f32 %v2850_v22 }
 0x570   : > { %4134 = vrcp.f32 %v2848_v0 }
 0x571   : > { %4136 = vrcp.f32 %v2854_v32 }
 0x572   : > { %4138 = vrcp.f32 %v2852_v2  ;;  %v3061_v2 = vld [vmem:[%s5614_s4 + $0x108] sm:$0xff] }
 0x573   : > { %4140 = vrcp.f32 %v2858_v9 }
 0x574   : > { %4142 = vrcp.f32 %v2856_v19 }
 0x575   : > { %v4119_v13 = vpop.eup %4118 }
 0x576   : > { %v4121_v33 = vpop.eup %4120 }
 0x577   : > { %v4123_v53 = vpop.eup %4122 }
 0x578   : > { %v4125_v25 = vpop.eup %4124 }
 0x579   : > { %v4127_v10 = vpop.eup %4126 }
 0x57a   : > { %v4129_v41 = vpop.eup %4128 }
 0x57b   : > { %v4131_v15 = vpop.eup %4130 }
 0x57c   : > { %v4133_v58 = vpop.eup %4132 }
 0x57d   : > { %v4135_v12 = vpop.eup %4134 }
 0x57e   : > { %v4137_v49 = vpop.eup %4136 }
 0x57f   : > { %v4139_v26 = vpop.eup %4138 }
 0x580   : > { %v4141_v27 = vpop.eup %4140 }
 0x581   : > { %v4143_v22 = vpop.eup %4142 }
 0x584   : > { %v3820_v50 = vpop.f32.mrf.mxu0 }
 0x585   : > { %v3046_v1 = vmul.f32 %v4123_v53, %v3820_v50  ;;  %v3066_v53 = vld [vmem:[%s5614_s4 + $0x130] sm:$0xff] }
 0x586   : > { %v2981_v28 = vpop.f32.mrf.mxu0 }
 0x587   : > { %v3044_v40 = vmul.f32 %v4113_v39, %v2981_v28 }
 0x588   : > { %v3821_v45 = vpop.f32.mrf.mxu0 }
 0x589   : > { %v3047_v60 = vmul.f32 %v4119_v13, %v3821_v45  ;;  %v3063_v45 = vld [vmem:[%s5614_s4 + $0x118] sm:$0xff] }
 0x58a   : > { %v2984_v47 = vpop.f32.mrf.mxu0 }
 0x58b   : > { %v3045_v31 = vmul.f32 %v4115_v46, %v2984_v47  ;;  %v3093_v35 = vpack.c.bf16 %v3047_v60, %v3046_v1  ;;  %v3064_v47 = vld [vmem:[%s5614_s4 + $0x120] sm:$0xff] }
 0x58c   : > { %v3824_v34 = vpop.f32.mrf.mxu0 }
 0x58d   : > { %v3092_v51 = vpack.c.bf16 %v3045_v31, %v3044_v40  ;;  %v3050_v8 = vmul.f32 %v4127_v10, %v3824_v34  ;;  %v3068_v40 = vld [vmem:[%s5614_s4 + $0x140] sm:$0xff] }
 0x58e   : > { %v2997_v56 = vpop.f32.mrf.mxu0 }
 0x58f   : > { %3133 = vmatmul.mubr.bf16.vlgmr.msra.gmra.mxu0 %v3092_v51  ;;  %v3048_v4 = vmul.f32 %v4117_v38, %v2997_v56  ;;  %v3065_v56 = vld [vmem:[%s5614_s4 + $0x128] sm:$0xff] }
 0x590   : > { %v3825_v43 = vpop.f32.mrf.mxu0  ;;  %3142 = vmatprep.mubr.bf16.mxu0 %v4153_v54  ;;  %v3069_v38 = vld [vmem:[%s5614_s4 + $0x148] sm:$0xff] }
 0x591   : > { %v3051_v7 = vmul.f32 %v4125_v25, %v3825_v43 }
 0x592   : > { %v3000_v62 = vpop.f32.mrf.mxu0 }
 0x593   : > { %v3049_v42 = vmul.f32 %v4121_v33, %v3000_v62  ;;  %v3095_v3 = vpack.c.bf16 %v3051_v7, %v3050_v8  ;;  %v3070_v62 = vld [vmem:[%s5614_s4 + $0x150] sm:$0xff] }
 0x594   : > { %v3828_v44 = vpop.f32.mrf.mxu0 }
 0x595   : > { %v3094_v6 = vpack.c.bf16 %v3049_v42, %v3048_v4  ;;  %v3054_v61 = vmul.f32 %v4135_v12, %v3828_v44 }
 0x596   : > { %v3013_v48 = vpop.f32.mrf.mxu0 }
 0x597   : > { %3143 = vmatmul.mubr.bf16.gmra.mxu0 %v3093_v35  ;;  %3153 = vmatmul.mubr.bf16.vlgmr.msra.gmra.mxu1 %v3094_v6  ;;  %v3052_v57 = vmul.f32 %v4131_v15, %v3013_v48  ;;  %v3067_v35 = vld [vmem:[%s5614_s4 + $0x138] sm:$0xff] }
 0x598   : > { %3162 = vmatprep.mubr.bf16.mxu1 %v4153_v54  ;;  %v3829_v11 = vpop.f32.mrf.mxu0  ;;  %v3071_v6 = vld [vmem:[%s5614_s4 + $0x158] sm:$0xff] }
 0x599   : > { %v3055_v59 = vmul.f32 %v4133_v58, %v3829_v11  ;;  %v3072_v11 = vld [vmem:[%s5614_s4 + $0x160] sm:$0xff] }
 0x59a   : > { %v3016_v52 = vpop.f32.mrf.mxu0 }
 0x59b   : > { %v3053_v55 = vmul.f32 %v4129_v41, %v3016_v52  ;;  %v3097_v37 = vpack.c.bf16 %v3055_v59, %v3054_v61  ;;  %v3073_v41 = vld [vmem:[%s5614_s4 + $0x168] sm:$0xff]  ;;  %v3076_v59 = vld [vmem:[%s5614_s4 + $0x180] sm:$0xff] }
 0x59c   : > { %v3832_v14 = vpop.f32.mrf.mxu0 }
 0x59d   : > { %v3096_v16 = vpack.c.bf16 %v3053_v55, %v3052_v57  ;;  %v3058_v0 = vmul.f32 %v4143_v22, %v3832_v14  ;;  %v3074_v14 = vld [vmem:[%s5614_s4 + $0x170] sm:$0xff] }
 0x59e   : > { %v3029_v17 = vpop.f32.mrf.mxu0 }
 0x59f   : > { %3163 = vmatmul.mubr.bf16.gmra.mxu1 %v3095_v3  ;;  %v3056_v23 = vmul.f32 %v4139_v26, %v3029_v17  ;;  %v3075_v17 = vld [vmem:[%s5614_s4 + $0x178] sm:$0xff] }
 0x5a0   : > { %3172 = vmatprep.mubr.bf16.mxu1 %v4153_v54  ;;  %v3833_v24 = vpop.f32.mrf.mxu0  ;;  %v3079_v26 = vld [vmem:[%s5614_s4 + $0x198] sm:$0xff] }
 0x5a1   : > { %v3059_v20 = vmul.f32 %v4141_v27, %v3833_v24  ;;  %v3077_v24 = vld [vmem:[%s5614_s4 + $0x188] sm:$0xff]  ;;  %v3080_v27 = vld [vmem:[%s5614_s4 + $0x1a0] sm:$0xff] }
 0x5a2   : > { %v3032_v63 = vpop.f32.mrf.mxu0 }
 0x5a3   : > { %v3057_v36 = vmul.f32 %v4137_v49, %v3032_v63  ;;  %v3099_v21 = vpack.c.bf16 %v3059_v20, %v3058_v0  ;;  %v3078_v63 = vld [vmem:[%s5614_s4 + $0x190] sm:$0xff]  ;;  %v3081_v0 = vld [vmem:[%s5614_s4 + $0x1a8] sm:$0xff] }
 0x5a5   : > { %v3098_v18 = vpack.c.bf16 %v3057_v36, %v3056_v23 }
 0x5a7   : > { %3173 = vmatmul.mubr.bf16.gmra.mxu1 %v3096_v16 }
 0x5a8   : > { %3182 = vmatprep.mubr.bf16.mxu1 %v4153_v54 }
 0x5af   : > { %3183 = vmatmul.mubr.bf16.gmra.mxu1 %v3097_v37 }
 0x5b0   : > { %3192 = vmatprep.mubr.bf16.mxu1 %v4153_v54 }
 0x5b7   : > { %3193 = vmatmul.mubr.bf16.gmra.mxu1 %v3098_v18 }
 0x5b8   : > { %3202 = vmatprep.mubr.bf16.mxu1 %v4153_v54  ;;  %v3062_v54 = vld [vmem:[%s5614_s4 + $0x110] sm:$0xff] }
 0x5bf   : > { %3203 = vmatmul.mubr.bf16.gmra.mxu1 %v3099_v21 }
 0x64f   : > { %v3134_v32 = vpop.f32.mrf.mxu0 }
 0x650   : > { %v3213_v29 = vadd.f32 %v3134_v32, %v3060_v5  ;;  %v3082_v32 = vld [vmem:[%s5614_s4 + $0x1b0] sm:$0xff] }
 0x651   : > { %v3136_v30 = vpop.f32.mrf.mxu0 }
 0x652   : > { %3245 = vst [vmem:[%s5614_s4 + $0x100] sm:$0xff] %v3213_v29  ;;  %v3214_v50 = vadd.f32 %v3136_v30, %v3061_v2  ;;  %v3083_v30 = vld [vmem:[%s5614_s4 + $0x1b8] sm:$0xff] }
 0x653   : > { %v3138_v28 = vpop.f32.mrf.mxu0 }
 0x654   : > { %3246 = vst.msk [vmem:[%s5614_s4 + $0x108] sm:$0xff] %vm389_vm11, %v3214_v50  ;;  %v3215_v39 = vadd.f32 %v3138_v28, %v3062_v54  ;;  %v3084_v28 = vld [vmem:[%s5614_s4 + $0x1c0] sm:$0xff] }
 0x655   : > { %v3140_v46 = vpop.f32.mrf.mxu0 }
 0x656   : > { %3247 = vst [vmem:[%s5614_s4 + $0x110] sm:$0xff] %v3215_v39  ;;  %v3216_v31 = vadd.f32 %v3140_v46, %v3063_v45  ;;  %v3085_v46 = vld [vmem:[%s5614_s4 + $0x1c8] sm:$0xff] }
 0x657   : > { %v3144_v34 = vpop.f32.mrf.mxu0  ;;  %v3154_v51 = vpop.f32.mrf.mxu1 }
 0x658   : > { %3248 = vst.msk [vmem:[%s5614_s4 + $0x118] sm:$0xff] %vm389_vm11, %v3216_v31  ;;  %v3217_v13 = vadd.f32 %v3144_v34, %v3064_v47  ;;  %v3221_v43 = vadd.f32 %v3154_v51, %v3068_v40  ;;  %v3086_v31 = vld [vmem:[%s5614_s4 + $0x1d0] sm:$0xff] }
 0x659   : > { %v3146_v33 = vpop.f32.mrf.mxu0  ;;  %v3156_v60 = vpop.f32.mrf.mxu1 }
 0x65a   : > { %3249 = vst [vmem:[%s5614_s4 + $0x120] sm:$0xff] %v3217_v13  ;;  %3253 = vst [vmem:[%s5614_s4 + $0x140] sm:$0xff] %v3221_v43  ;;  %v3218_v1 = vadd.f32 %v3146_v33, %v3065_v56  ;;  %v3222_v4 = vadd.f32 %v3156_v60, %v3069_v38  ;;  %v3087_v56 = vld [vmem:[%s5614_s4 + $0x1d8] sm:$0xff]  ;;  %v3088_v43 = vld [vmem:[%s5614_s4 + $0x1e0] sm:$0xff] }
 0x65b   : > { %v3148_v42 = vpop.f32.mrf.mxu0  ;;  %v3158_v44 = vpop.f32.mrf.mxu1 }
 0x65c   : > { %3250 = vst.msk [vmem:[%s5614_s4 + $0x128] sm:$0xff] %vm389_vm11, %v3218_v1  ;;  %3254 = vst.msk [vmem:[%s5614_s4 + $0x148] sm:$0xff] %vm389_vm11, %v3222_v4  ;;  %v3219_v48 = vadd.f32 %v3148_v42, %v3066_v53  ;;  %v3223_v25 = vadd.f32 %v3158_v44, %v3070_v62  ;;  %v3089_v53 = vld [vmem:[%s5614_s4 + $0x1e8] sm:$0xff]  ;;  %v3090_v4 = vld [vmem:[%s5614_s4 + $0x1f0] sm:$0xff] }
 0x65d   : > { %v3150_v7 = vpop.f32.mrf.mxu0  ;;  %v3160_v10 = vpop.f32.mrf.mxu1 }
 0x65e   : > { %3251 = vst [vmem:[%s5614_s4 + $0x130] sm:$0xff] %v3219_v48  ;;  %3255 = vst [vmem:[%s5614_s4 + $0x150] sm:$0xff] %v3223_v25  ;;  %v3220_v8 = vadd.f32 %v3150_v7, %v3067_v35  ;;  %v3224_v3 = vadd.f32 %v3160_v10, %v3071_v6  ;;  %v3091_v35 = vld [vmem:[%s5614_s4 + $0x1f8] sm:$0xff] }
 0x65f   : > { %v3164_v52 = vpop.f32.mrf.mxu1 }
 0x660   : > { %3252 = vst.msk [vmem:[%s5614_s4 + $0x138] sm:$0xff] %vm389_vm11, %v3220_v8  ;;  %3256 = vst.msk [vmem:[%s5614_s4 + $0x158] sm:$0xff] %vm389_vm11, %v3224_v3  ;;  %v3225_v55 = vadd.f32 %v3164_v52, %v3072_v11 }
 0x661   : > { %v3166_v15 = vpop.f32.mrf.mxu1 }
 0x662   : > { %3257 = vst [vmem:[%s5614_s4 + $0x160] sm:$0xff] %v3225_v55  ;;  %v3226_v57 = vadd.f32 %v3166_v15, %v3073_v41 }
 0x663   : > { %v3168_v16 = vpop.f32.mrf.mxu1 }
 0x664   : > { %3258 = vst.msk [vmem:[%s5614_s4 + $0x168] sm:$0xff] %vm389_vm11, %v3226_v57  ;;  %v3227_v58 = vadd.f32 %v3168_v16, %v3074_v14 }
 0x665   : > { %v3170_v9 = vpop.f32.mrf.mxu1 }
 0x666   : > { %3259 = vst [vmem:[%s5614_s4 + $0x170] sm:$0xff] %v3227_v58  ;;  %v3228_v12 = vadd.f32 %v3170_v9, %v3075_v17 }
 0x667   : > { %v3174_v19 = vpop.f32.mrf.mxu1 }
 0x668   : > { %3260 = vst.msk [vmem:[%s5614_s4 + $0x178] sm:$0xff] %vm389_vm11, %v3228_v12  ;;  %v3229_v61 = vadd.f32 %v3174_v19, %v3076_v59 }
 0x669   : > { %v3176_v37 = vpop.f32.mrf.mxu1 }
 0x66a   : > { %3261 = vst [vmem:[%s5614_s4 + $0x180] sm:$0xff] %v3229_v61  ;;  %v3230_v49 = vadd.f32 %v3176_v37, %v3077_v24 }
 0x66b   : > { %v3178_v36 = vpop.f32.mrf.mxu1 }
 0x66c   : > { %3262 = vst.msk [vmem:[%s5614_s4 + $0x188] sm:$0xff] %vm389_vm11, %v3230_v49  ;;  %v3231_v23 = vadd.f32 %v3178_v36, %v3078_v63 }
 0x66d   : > { %v3180_v18 = vpop.f32.mrf.mxu1 }
 0x66e   : > { %3263 = vst [vmem:[%s5614_s4 + $0x190] sm:$0xff] %v3231_v23  ;;  %v3232_v20 = vadd.f32 %v3180_v18, %v3079_v26 }
 0x66f   : > { %v3184_v22 = vpop.f32.mrf.mxu1 }
 0x670   : > { %3264 = vst.msk [vmem:[%s5614_s4 + $0x198] sm:$0xff] %vm389_vm11, %v3232_v20  ;;  %v3233_v21 = vadd.f32 %v3184_v22, %v3080_v27 }
 0x671   : > { %v3186_v5 = vpop.f32.mrf.mxu1 }
 0x672   : > { %3265 = vst [vmem:[%s5614_s4 + $0x1a0] sm:$0xff] %v3233_v21  ;;  %v3234_v2 = vadd.f32 %v3186_v5, %v3081_v0 }
 0x673   : > { %v3188_v29 = vpop.f32.mrf.mxu1 }
 0x674   : > { %3266 = vst.msk [vmem:[%s5614_s4 + $0x1a8] sm:$0xff] %vm389_vm11, %v3234_v2  ;;  %v3235_v54 = vadd.f32 %v3188_v29, %v3082_v32 }
 0x675   : > { %v3190_v50 = vpop.f32.mrf.mxu1 }
 0x676   : > { %3267 = vst [vmem:[%s5614_s4 + $0x1b0] sm:$0xff] %v3235_v54  ;;  %v3236_v45 = vadd.f32 %v3190_v50, %v3083_v30 }
 0x677   : > { %v3194_v39 = vpop.f32.mrf.mxu1 }
 0x678   : > { %3268 = vst.msk [vmem:[%s5614_s4 + $0x1b8] sm:$0xff] %vm389_vm11, %v3236_v45  ;;  %v3237_v47 = vadd.f32 %v3194_v39, %v3084_v28 }
 0x679   : > { %v3196_v40 = vpop.f32.mrf.mxu1 }
 0x67a   : > { %3269 = vst [vmem:[%s5614_s4 + $0x1c0] sm:$0xff] %v3237_v47  ;;  %v3238_v34 = vadd.f32 %v3196_v40, %v3085_v46 }
 0x67b   : > { %v3198_v51 = vpop.f32.mrf.mxu1 }
 0x67c   : > { %3270 = vst.msk [vmem:[%s5614_s4 + $0x1c8] sm:$0xff] %vm389_vm11, %v3238_v34  ;;  %v3239_v38 = vadd.f32 %v3198_v51, %v3086_v31 }
 0x67d   : > { %v3200_v13 = vpop.f32.mrf.mxu1 }
 0x67e   : > { %3271 = vst [vmem:[%s5614_s4 + $0x1d0] sm:$0xff] %v3239_v38  ;;  %v3240_v33 = vadd.f32 %v3200_v13, %v3087_v56 }
 0x67f   : > { %v3204_v60 = vpop.f32.mrf.mxu1 }
 0x680   : > { %3272 = vst.msk [vmem:[%s5614_s4 + $0x1d8] sm:$0xff] %vm389_vm11, %v3240_v33  ;;  %v3241_v62 = vadd.f32 %v3204_v60, %v3088_v43 }
 0x681   : > { %v3206_v1 = vpop.f32.mrf.mxu1 }
 0x682   : > { %3273 = vst [vmem:[%s5614_s4 + $0x1e0] sm:$0xff] %v3241_v62  ;;  %v3242_v42 = vadd.f32 %v3206_v1, %v3089_v53 }
 0x683   : > { %v3208_v44 = vpop.f32.mrf.mxu1 }
 0x684   : > { %3274 = vst.msk [vmem:[%s5614_s4 + $0x1e8] sm:$0xff] %vm389_vm11, %v3242_v42  ;;  %v3243_v6 = vadd.f32 %v3208_v44, %v3090_v4  ;;  %457 = sbr.rel (!%p455_p0) target bundleno = 64 (0x40), region = 45 }
 0x685   : > { %v3210_v48 = vpop.f32.mrf.mxu1 }
 0x686   : > { %3275 = vst [vmem:[%s5614_s4 + $0x1f0] sm:$0xff] %v3243_v6  ;;  %v3244_v25 = vadd.f32 %v3210_v48, %v3091_v35 }
 0x688   : > { %3276 = vst.msk [vmem:[%s5614_s4 + $0x1f8] sm:$0xff] %vm389_vm11, %v3244_v25 }

</bundles_post_ra>
